<compile_context>
chip_gen: v6e
topology: v6e:2x2x1
jax: 0.10.0
libtpu: 0.0.40
codegen_flags: <defaults>
</compile_context>

<pallas_src>
import jax
import jax.numpy as jnp
from jax.experimental import pallas as pl
from jax.experimental.pallas import tpu as pltpu

GN_GROUPS = 32
GN_EPS = 1e-6


# --------------------------------------------------------------------------- #
# Stage 1: GroupNorm + q/k/v 1x1 projections (one grid step = one image)
# --------------------------------------------------------------------------- #
def _gn_qkv_kernel(
    x_ref,                     # (1, C, HW) input
    gavg_ref,                  # (C, C) group-averaging matrix (incl. 1/(cpg*HW))
    gg_ref, gb_ref,            # (C, 1) GroupNorm gamma / beta (f32)
    wq_ref, bq_ref,            # (C, C) bf16, (1, C) f32   (bias as a row: q is (HW, C))
    wk_ref, bk_ref,            # (C, C) bf16, (C, 1) f32
    wv_ref, bv_ref,            # (C, C) bf16, (C, 1) f32
    qT_ref,                    # (1, HW, C) bf16 out  (q transposed, pre-scaled)
    k_ref,                     # (1, C, HW) bf16 out
    v_ref,                     # (1, C, HW) bf16 out
):
    x = x_ref[0].astype(jnp.float32)                       # (C, HW)
    C = x.shape[0]

    # GroupNorm stats: reduce over HW first (lane reduction), then a tiny
    # (C,C)x(C,1) matmul to average within groups.
    s = jnp.sum(x, axis=-1, keepdims=True)                 # (C, 1)
    s2 = jnp.sum(x * x, axis=-1, keepdims=True)            # (C, 1)
    gavg = gavg_ref[...]
    mu = jnp.dot(gavg, s, preferred_element_type=jnp.float32)    # (C, 1)
    ex2 = jnp.dot(gavg, s2, preferred_element_type=jnp.float32)  # (C, 1)
    var = jnp.maximum(ex2 - mu * mu, 0.0)                  # clamp: cancellation safety
    inv = jax.lax.rsqrt(var + GN_EPS)                      # EUP rsqrt
    h = ((x - mu) * (inv * gg_ref[...]) + gb_ref[...]).astype(jnp.bfloat16)

    # 1x1 convolutions == channel matmuls (bf16 operands, f32 accumulation).
    scale = float(C) ** -0.5
    # q directly in (HW, C) layout: no explicit transpose needed downstream.
    qT = jax.lax.dot_general(h, wq_ref[...], (((0,), (1,)), ((), ())),
                             preferred_element_type=jnp.float32)  # (HW, C)
    qT = (qT + bq_ref[...]) * scale                         # fold softmax scale into q
    k = jnp.dot(wk_ref[...], h, preferred_element_type=jnp.float32) + bk_ref[...]
    v = jnp.dot(wv_ref[...], h, preferred_element_type=jnp.float32) + bv_ref[...]

    qT_ref[0] = qT.astype(qT_ref.dtype)
    k_ref[0] = k.astype(k_ref.dtype)
    v_ref[0] = v.astype(v_ref.dtype)


# --------------------------------------------------------------------------- #
# Stage 2: attention over spatial positions + proj_out + residual,
#          tiled over query positions (TQ rows of the score matrix per step).
# --------------------------------------------------------------------------- #
def _attn_proj_kernel(
    qT_ref,                    # (1, TQ, C) bf16  (pre-scaled q, transposed)
    k_ref,                     # (1, C, HW) bf16  (resident across query tiles)
    v_ref,                     # (1, C, HW) bf16
    wp_ref, bp_ref,            # (C, C) bf16, (C, 1) f32
    x_ref,                     # (1, C, TQ) residual input
    o_ref,                     # (1, C, TQ) output
):
    qT = qT_ref[0]                                          # (TQ, C) bf16
    k = k_ref[0]                                            # (C, HW) bf16
    v = v_ref[0]                                            # (C, HW) bf16

    # scores[i, j] = scale * sum_c q[c, i+off] k[c, j]  (scale already in q)
    scores = jnp.dot(qT, k, preferred_element_type=jnp.float32)   # (TQ, HW) f32
    m = jnp.max(scores, axis=-1, keepdims=True)
    p = jnp.exp(scores - m)                                  # unnormalized probs
    l = jnp.sum(p, axis=-1, keepdims=True)                   # (TQ, 1)

    # attn[c, i] = sum_j v[c, j] p[i, j]  (NT contraction, bf16 operands)
    attn = jax.lax.dot_general(v, p.astype(jnp.bfloat16),
                               (((1,), (1,)), ((), ())),
                               preferred_element_type=jnp.float32)  # (C, TQ)
    # Normalize the small (C, TQ) tensor (not the (TQ, HW) one); EUP reciprocal.
    attn = attn * jnp.transpose(pl.reciprocal(l, approx=True))      # bcast (1, TQ)

    # proj_out (1x1 conv) + residual, f32 accumulate then cast once.
    o = jnp.dot(wp_ref[...], attn.astype(jnp.bfloat16),
                preferred_element_type=jnp.float32) + bp_ref[...]   # (C, TQ)
    o_ref[0] = (x_ref[0].astype(jnp.float32) + o).astype(o_ref.dtype)


# --------------------------------------------------------------------------- #
# Wrapper
# --------------------------------------------------------------------------- #
def _pick_query_tile(HW):
    """Largest multiple-of-128 tile <= 512 that divides HW with >= 2 tiles."""
    for cand in (512, 256, 128):
        if HW % cand == 0 and HW // cand >= 2:
            return cand
    return HW


def _vmem_limit(nbytes):
    # Clamp to [32 MiB, 64 MiB]: 64 MiB is v7x's full VMEM, safe everywhere.
    return int(min(max(nbytes, 32 * 1024 * 1024), 64 * 1024 * 1024))


def spatial_self_attention(x, params):
    """Forward pass of SpatialSelfAttention. x: (B, C, H, W)."""
    B, C, H, W = x.shape
    HW = H * W
    assert C % GN_GROUPS == 0, "GroupNorm(32) requires channels divisible by 32"
    cpg = C // GN_GROUPS

    f32, bf16 = jnp.float32, jnp.bfloat16
    col = lambda v: v.reshape(C, 1).astype(f32)
    row = lambda v: v.reshape(1, C).astype(f32)

    # Group-averaging matrix for the reduce-first GroupNorm stats:
    # (gavg @ per-channel-sums)[c] = mean over c's group over all pixels.
    gidx = jnp.arange(C) // cpg
    gavg = (gidx[:, None] == gidx[None, :]).astype(f32) / float(cpg * HW)

    x3 = x.reshape(B, C, HW)               # contiguous -> free reshape
    itemsize = x.dtype.itemsize

    # ---------------- stage 1: GroupNorm + q/k/v projections -----------------
    k1_bytes = (
        2 * C * HW * itemsize              # x block (double-buffered)
        + 2 * 3 * C * HW * 2               # bf16 q/k/v outputs (double-buffered)
        + 6 * C * HW * 4                   # f32 temporaries (h, accumulators)
        + 5 * C * C * 4                    # weights + gavg (generous)
    )
    const1 = lambda shape: pl.BlockSpec(shape, lambda b: (0, 0))
    qT, k, v = pl.pallas_call(
        _gn_qkv_kernel,
        out_shape=(
            jax.ShapeDtypeStruct((B, HW, C), bf16),
            jax.ShapeDtypeStruct((B, C, HW), bf16),
            jax.ShapeDtypeStruct((B, C, HW), bf16),
        ),
        grid_spec=pltpu.PrefetchScalarGridSpec(
            num_scalar_prefetch=0,
            grid=(B,),
            in_specs=[
                pl.BlockSpec((1, C, HW), lambda b: (b, 0, 0)),   # x
                const1((C, C)),                                   # gavg
                const1((C, 1)), const1((C, 1)),                   # gamma / beta
                const1((C, C)), const1((1, C)),                   # wq, bq (row)
                const1((C, C)), const1((C, 1)),                   # wk, bk
                const1((C, C)), const1((C, 1)),                   # wv, bv
            ],
            out_specs=[
                pl.BlockSpec((1, HW, C), lambda b: (b, 0, 0)),    # q^T
                pl.BlockSpec((1, C, HW), lambda b: (b, 0, 0)),    # k
                pl.BlockSpec((1, C, HW), lambda b: (b, 0, 0)),    # v
            ],
        ),
        compiler_params=pltpu.CompilerParams(
            dimension_semantics=("parallel",),
            vmem_limit_bytes=_vmem_limit(k1_bytes),
        ),
    )(
        x3, gavg,
        col(params["gn_gamma"]), col(params["gn_beta"]),
        params["wq"].astype(bf16), row(params["bq"]),
        params["wk"].astype(bf16), col(params["bk"]),
        params["wv"].astype(bf16), col(params["bv"]),
    )

    # ---------------- stage 2: attention + proj_out + residual ---------------
    TQ = _pick_query_tile(HW)
    NQ = HW // TQ
    k2_bytes = (
        2 * 2 * C * HW * 2                 # k, v blocks (double-buffered bf16)
        + 2 * TQ * C * 2                   # q^T tile
        + 2 * 2 * C * TQ * itemsize        # x tile in + out tile
        + 2 * TQ * HW * (4 + 2)            # scores f32 + p bf16 (+ headroom)
        + 4 * C * TQ * 4 + 2 * C * C * 4   # attn/o temporaries + wp
    )
    const2 = lambda shape: pl.BlockSpec(shape, lambda b, qi: (0, 0))
    out = pl.pallas_call(
        _attn_proj_kernel,
        out_shape=jax.ShapeDtypeStruct((B, C, HW), x.dtype),
        grid_spec=pltpu.PrefetchScalarGridSpec(
            num_scalar_prefetch=0,
            grid=(B, NQ),                                      # query tiles innermost:
            in_specs=[                                         # k/v fetched once per b
                pl.BlockSpec((1, TQ, C), lambda b, qi: (b, qi, 0)),   # q^T tile
                pl.BlockSpec((1, C, HW), lambda b, qi: (b, 0, 0)),    # k (resident)
                pl.BlockSpec((1, C, HW), lambda b, qi: (b, 0, 0)),    # v (resident)
                const2((C, C)),                                       # wp
                const2((C, 1)),                                       # bp
                pl.BlockSpec((1, C, TQ), lambda b, qi: (b, 0, qi)),   # x (residual)
            ],
            out_specs=pl.BlockSpec((1, C, TQ), lambda b, qi: (b, 0, qi)),
        ),
        compiler_params=pltpu.CompilerParams(
            dimension_semantics=("parallel", "parallel"),
            vmem_limit_bytes=_vmem_limit(k2_bytes),
        ),
    )(qT, k, v, params["wp"].astype(bf16), col(params["bp"]), x3)

    return out.reshape(B, C, H, W)


# --------------------------------------------------------------------------- #
# Test
# --------------------------------------------------------------------------- #
if __name__ == "__main__":
    key = jax.random.PRNGKey(0)
    ks = jax.random.split(key, 11)
    B, C, H, W = 2, 64, 16, 16                # C must be a multiple of 32 (GroupNorm)
    x = jax.random.normal(ks[0], (B, C, H, W), dtype=jnp.float32)

    wscale = 1.0 / (C ** 0.5)
    params = dict(
        gn_gamma=1.0 + 0.1 * jax.random.normal(ks[1], (C,), jnp.float32),
        gn_beta=0.1 * jax.random.normal(ks[2], (C,), jnp.float32),
        wq=wscale * jax.random.normal(ks[3], (C, C), jnp.float32),
        bq=0.02 * jax.random.normal(ks[4], (C,), jnp.float32),
        wk=wscale * jax.random.normal(ks[5], (C, C), jnp.float32),
        bk=0.02 * jax.random.normal(ks[6], (C,), jnp.float32),
        wv=wscale * jax.random.normal(ks[7], (C, C), jnp.float32),
        bv=0.02 * jax.random.normal(ks[8], (C,), jnp.float32),
        wp=wscale * jax.random.normal(ks[9], (C, C), jnp.float32),
        bp=0.02 * jax.random.normal(ks[10], (C,), jnp.float32),
    )

    y = spatial_self_attention(x, params)
    y = jax.block_until_ready(y)

    # ---- pure-JAX reference mirroring the PyTorch forward (f32) -------------
    def reference(x, p):
        B, C, H, W = x.shape
        cpg = C // GN_GROUPS
        xg = x.reshape(B, GN_GROUPS, cpg, H, W)
        mu = xg.mean(axis=(2, 3, 4), keepdims=True)
        var = ((xg - mu) ** 2).mean(axis=(2, 3, 4), keepdims=True)
        hn = ((xg - mu) / jnp.sqrt(var + GN_EPS)).reshape(B, C, H, W)
        hn = hn * p["gn_gamma"][None, :, None, None] + p["gn_beta"][None, :, None, None]
        hf = hn.reshape(B, C, H * W)
        q = jnp.einsum("oc,bcn->bon", p["wq"], hf) + p["bq"][None, :, None]
        k = jnp.einsum("oc,bcn->bon", p["wk"], hf) + p["bk"][None, :, None]
        v = jnp.einsum("oc,bcn->bon", p["wv"], hf) + p["bv"][None, :, None]
        w_ = jnp.einsum("bci,bcj->bij", q, k) * (C ** -0.5)
        w_ = jax.nn.softmax(w_, axis=-1)
        o = jnp.einsum("bcj,bij->bci", v, w_)
        o = jnp.einsum("oc,bcn->bon", p["wp"], o) + p["bp"][None, :, None]
        return x + o.reshape(B, C, H, W)

    ref = reference(x, params)
    max_err = jnp.max(jnp.abs(y - ref))
    # bf16 MXU operands -> slightly looser tolerance than a pure-f32 kernel.
    assert jnp.allclose(y, ref, atol=3e-2, rtol=3e-2), \
        f"mismatch vs reference, max abs err={max_err}"

    print("KERNEL_OK")
</pallas_src>

<mosaic_0001>
module attributes {stable_mosaic.version = 11 : i64} {
  func.func @_gn_qkv_kernel(%arg0: i32, %arg1: memref<1x64x256xf32, #tpu.memory_space<vmem>>, %arg2: memref<64x64xf32, #tpu.memory_space<vmem>>, %arg3: memref<64x1xf32, #tpu.memory_space<vmem>>, %arg4: memref<64x1xf32, #tpu.memory_space<vmem>>, %arg5: memref<64x64xbf16, #tpu.memory_space<vmem>>, %arg6: memref<1x64xf32, #tpu.memory_space<vmem>>, %arg7: memref<64x64xbf16, #tpu.memory_space<vmem>>, %arg8: memref<64x1xf32, #tpu.memory_space<vmem>>, %arg9: memref<64x64xbf16, #tpu.memory_space<vmem>>, %arg10: memref<64x1xf32, #tpu.memory_space<vmem>>, %arg11: memref<1x256x64xbf16, #tpu.memory_space<vmem>>, %arg12: memref<1x64x256xbf16, #tpu.memory_space<vmem>>, %arg13: memref<1x64x256xbf16, #tpu.memory_space<vmem>>) attributes {dimension_semantics = [#tpu.dimension_semantics<parallel>], iteration_bounds = array<i64: 2>, scalar_prefetch = 0 : i64, scratch_operands = 0 : i64, tpu.core_type = #tpu.core_type<tc>, window_params = [{transform_indices = @transform_0, window_bounds = array<i64: 1, 64, 256>}, {pipeline_mode = #tpu.pipeline_mode<synchronous>, transform_indices = @transform_1, window_bounds = array<i64: 64, 64>}, {pipeline_mode = #tpu.pipeline_mode<synchronous>, transform_indices = @transform_2, window_bounds = array<i64: 64, 1>}, {pipeline_mode = #tpu.pipeline_mode<synchronous>, transform_indices = @transform_3, window_bounds = array<i64: 64, 1>}, {pipeline_mode = #tpu.pipeline_mode<synchronous>, transform_indices = @transform_4, window_bounds = array<i64: 64, 64>}, {pipeline_mode = #tpu.pipeline_mode<synchronous>, transform_indices = @transform_5, window_bounds = array<i64: 1, 64>}, {pipeline_mode = #tpu.pipeline_mode<synchronous>, transform_indices = @transform_6, window_bounds = array<i64: 64, 64>}, {pipeline_mode = #tpu.pipeline_mode<synchronous>, transform_indices = @transform_7, window_bounds = array<i64: 64, 1>}, {pipeline_mode = #tpu.pipeline_mode<synchronous>, transform_indices = @transform_8, window_bounds = array<i64: 64, 64>}, {pipeline_mode = #tpu.pipeline_mode<synchronous>, transform_indices = @transform_9, window_bounds = array<i64: 64, 1>}, {transform_indices = @transform_10, window_bounds = array<i64: 1, 256, 64>}, {transform_indices = @transform_11, window_bounds = array<i64: 1, 64, 256>}, {transform_indices = @transform_12, window_bounds = array<i64: 1, 64, 256>}]} {
    %c0 = arith.constant 0 : index
    %c0_0 = arith.constant 0 : index
    %c0_1 = arith.constant 0 : index
    %0 = vector.load %arg1[%c0, %c0_0, %c0_1] : memref<1x64x256xf32, #tpu.memory_space<vmem>>, vector<1x64x256xf32>
    %1 = vector.shape_cast %0 : vector<1x64x256xf32> to vector<64x256xf32>
    %cst = arith.constant dense<0.000000e+00> : vector<64xf32>
    %2 = vector.multi_reduction <add>, %1, %cst [1] : vector<64x256xf32> to vector<64xf32>
    %3 = vector.shape_cast %2 : vector<64xf32> to vector<64x1xf32>
    %4 = arith.mulf %1, %1 : vector<64x256xf32>
    %cst_2 = arith.constant dense<0.000000e+00> : vector<64xf32>
    %5 = vector.multi_reduction <add>, %4, %cst_2 [1] : vector<64x256xf32> to vector<64xf32>
    %6 = vector.shape_cast %5 : vector<64xf32> to vector<64x1xf32>
    %c0_3 = arith.constant 0 : index
    %c0_4 = arith.constant 0 : index
    %7 = vector.load %arg2[%c0_3, %c0_4] : memref<64x64xf32, #tpu.memory_space<vmem>>, vector<64x64xf32>
    %cst_5 = arith.constant dense<0.000000e+00> : vector<64x1xf32>
    %8 = tpu.matmul %7, %3, %cst_5 {dimension_numbers = #tpu.dot_dimension_numbers<[1], [0], [0], [1], [0, 0, 1, 1], [], []>} : vector<64x64xf32>, vector<64x1xf32>, vector<64x1xf32> -> vector<64x1xf32>
    %cst_6 = arith.constant dense<0.000000e+00> : vector<64x1xf32>
    %9 = tpu.matmul %7, %6, %cst_6 {dimension_numbers = #tpu.dot_dimension_numbers<[1], [0], [0], [1], [0, 0, 1, 1], [], []>} : vector<64x64xf32>, vector<64x1xf32>, vector<64x1xf32> -> vector<64x1xf32>
    %10 = arith.mulf %8, %8 : vector<64x1xf32>
    %11 = arith.subf %9, %10 : vector<64x1xf32>
    %cst_7 = arith.constant 0.000000e+00 : f32
    %12 = vector.broadcast %cst_7 : f32 to vector<64x1xf32>
    %13 = arith.maximumf %11, %12 : vector<64x1xf32>
    %cst_8 = arith.constant 9.99999997E-7 : f32
    %14 = vector.broadcast %cst_8 : f32 to vector<64x1xf32>
    %15 = arith.addf %13, %14 : vector<64x1xf32>
    %16 = math.rsqrt %15 : vector<64x1xf32>
    %17 = vector.broadcast %8 : vector<64x1xf32> to vector<64x256xf32>
    %18 = arith.subf %1, %17 : vector<64x256xf32>
    %c0_9 = arith.constant 0 : index
    %c0_10 = arith.constant 0 : index
    %19 = vector.load %arg3[%c0_9, %c0_10] : memref<64x1xf32, #tpu.memory_space<vmem>>, vector<64x1xf32>
    %20 = arith.mulf %16, %19 : vector<64x1xf32>
    %21 = vector.broadcast %20 : vector<64x1xf32> to vector<64x256xf32>
    %22 = arith.mulf %18, %21 : vector<64x256xf32>
    %c0_11 = arith.constant 0 : index
    %c0_12 = arith.constant 0 : index
    %23 = vector.load %arg4[%c0_11, %c0_12] : memref<64x1xf32, #tpu.memory_space<vmem>>, vector<64x1xf32>
    %24 = vector.broadcast %23 : vector<64x1xf32> to vector<64x256xf32>
    %25 = arith.addf %22, %24 : vector<64x256xf32>
    %26 = arith.truncf %25 : vector<64x256xf32> to vector<64x256xbf16>
    %c0_13 = arith.constant 0 : index
    %c0_14 = arith.constant 0 : index
    %27 = vector.load %arg5[%c0_13, %c0_14] : memref<64x64xbf16, #tpu.memory_space<vmem>>, vector<64x64xbf16>
    %cst_15 = arith.constant dense<0.000000e+00> : vector<256x64xf32>
    %28 = tpu.matmul %26, %27, %cst_15 {dimension_numbers = #tpu.dot_dimension_numbers<[0], [1], [1], [0], [0, 1, 1, 0], [], []>} : vector<64x256xbf16>, vector<64x64xbf16>, vector<256x64xf32> -> vector<256x64xf32>
    %c0_16 = arith.constant 0 : index
    %c0_17 = arith.constant 0 : index
    %29 = vector.load %arg6[%c0_16, %c0_17] : memref<1x64xf32, #tpu.memory_space<vmem>>, vector<1x64xf32>
    %30 = vector.broadcast %29 : vector<1x64xf32> to vector<256x64xf32>
    %31 = arith.addf %28, %30 : vector<256x64xf32>
    %cst_18 = arith.constant 1.250000e-01 : f32
    %32 = vector.broadcast %cst_18 : f32 to vector<256x64xf32>
    %33 = arith.mulf %31, %32 : vector<256x64xf32>
    %c0_19 = arith.constant 0 : index
    %c0_20 = arith.constant 0 : index
    %34 = vector.load %arg7[%c0_19, %c0_20] : memref<64x64xbf16, #tpu.memory_space<vmem>>, vector<64x64xbf16>
    %cst_21 = arith.constant dense<0.000000e+00> : vector<64x256xf32>
    %35 = tpu.matmul %34, %26, %cst_21 {dimension_numbers = #tpu.dot_dimension_numbers<[1], [0], [0], [1], [0, 0, 1, 1], [], []>} : vector<64x64xbf16>, vector<64x256xbf16>, vector<64x256xf32> -> vector<64x256xf32>
    %c0_22 = arith.constant 0 : index
    %c0_23 = arith.constant 0 : index
    %36 = vector.load %arg8[%c0_22, %c0_23] : memref<64x1xf32, #tpu.memory_space<vmem>>, vector<64x1xf32>
    %37 = vector.broadcast %36 : vector<64x1xf32> to vector<64x256xf32>
    %38 = arith.addf %35, %37 : vector<64x256xf32>
    %c0_24 = arith.constant 0 : index
    %c0_25 = arith.constant 0 : index
    %39 = vector.load %arg9[%c0_24, %c0_25] : memref<64x64xbf16, #tpu.memory_space<vmem>>, vector<64x64xbf16>
    %cst_26 = arith.constant dense<0.000000e+00> : vector<64x256xf32>
    %40 = tpu.matmul %39, %26, %cst_26 {dimension_numbers = #tpu.dot_dimension_numbers<[1], [0], [0], [1], [0, 0, 1, 1], [], []>} : vector<64x64xbf16>, vector<64x256xbf16>, vector<64x256xf32> -> vector<64x256xf32>
    %c0_27 = arith.constant 0 : index
    %c0_28 = arith.constant 0 : index
    %41 = vector.load %arg10[%c0_27, %c0_28] : memref<64x1xf32, #tpu.memory_space<vmem>>, vector<64x1xf32>
    %42 = vector.broadcast %41 : vector<64x1xf32> to vector<64x256xf32>
    %43 = arith.addf %40, %42 : vector<64x256xf32>
    %44 = arith.truncf %33 : vector<256x64xf32> to vector<256x64xbf16>
    %c0_29 = arith.constant 0 : index
    %c0_30 = arith.constant 0 : index
    %c0_31 = arith.constant 0 : index
    %45 = vector.load %arg11[%c0_29, %c0_30, %c0_31] : memref<1x256x64xbf16, #tpu.memory_space<vmem>>, vector<1x256x64xbf16>
    %46 = vector.shape_cast %45 : vector<1x256x64xbf16> to vector<256x64xbf16>
    %47 = vector.shape_cast %44 : vector<256x64xbf16> to vector<1x256x64xbf16>
    tpu.vector_store %arg11[%c0_29, %c0_30, %c0_31], %47 {strides = array<i32>} : memref<1x256x64xbf16, #tpu.memory_space<vmem>>, vector<1x256x64xbf16>,
    %48 = arith.truncf %38 : vector<64x256xf32> to vector<64x256xbf16>
    %c0_32 = arith.constant 0 : index
    %c0_33 = arith.constant 0 : index
    %c0_34 = arith.constant 0 : index
    %49 = vector.load %arg12[%c0_32, %c0_33, %c0_34] : memref<1x64x256xbf16, #tpu.memory_space<vmem>>, vector<1x64x256xbf16>
    %50 = vector.shape_cast %49 : vector<1x64x256xbf16> to vector<64x256xbf16>
    %51 = vector.shape_cast %48 : vector<64x256xbf16> to vector<1x64x256xbf16>
    tpu.vector_store %arg12[%c0_32, %c0_33, %c0_34], %51 {strides = array<i32>} : memref<1x64x256xbf16, #tpu.memory_space<vmem>>, vector<1x64x256xbf16>,
    %52 = arith.truncf %43 : vector<64x256xf32> to vector<64x256xbf16>
    %c0_35 = arith.constant 0 : index
    %c0_36 = arith.constant 0 : index
    %c0_37 = arith.constant 0 : index
    %53 = vector.load %arg13[%c0_35, %c0_36, %c0_37] : memref<1x64x256xbf16, #tpu.memory_space<vmem>>, vector<1x64x256xbf16>
    %54 = vector.shape_cast %53 : vector<1x64x256xbf16> to vector<64x256xbf16>
    %55 = vector.shape_cast %52 : vector<64x256xbf16> to vector<1x64x256xbf16>
    tpu.vector_store %arg13[%c0_35, %c0_36, %c0_37], %55 {strides = array<i32>} : memref<1x64x256xbf16, #tpu.memory_space<vmem>>, vector<1x64x256xbf16>,
    return
  }
  func.func @transform_0(%arg0: i32) -> (i32, i32, i32) {
    %c0_i32 = arith.constant 0 : i32
    %c0_i32_0 = arith.constant 0 : i32
    %c0_i32_1 = arith.constant 0 : i32
    return %arg0, %c0_i32, %c0_i32_0 : i32, i32, i32
  }
  func.func @transform_1(%arg0: i32) -> (i32, i32) {
    %c0_i32 = arith.constant 0 : i32
    %c0_i32_0 = arith.constant 0 : i32
    %c0_i32_1 = arith.constant 0 : i32
    return %c0_i32, %c0_i32_0 : i32, i32
  }
  func.func @transform_2(%arg0: i32) -> (i32, i32) {
    %c0_i32 = arith.constant 0 : i32
    %c0_i32_0 = arith.constant 0 : i32
    %c0_i32_1 = arith.constant 0 : i32
    return %c0_i32, %c0_i32_0 : i32, i32
  }
  func.func @transform_3(%arg0: i32) -> (i32, i32) {
    %c0_i32 = arith.constant 0 : i32
    %c0_i32_0 = arith.constant 0 : i32
    %c0_i32_1 = arith.constant 0 : i32
    return %c0_i32, %c0_i32_0 : i32, i32
  }
  func.func @transform_4(%arg0: i32) -> (i32, i32) {
    %c0_i32 = arith.constant 0 : i32
    %c0_i32_0 = arith.constant 0 : i32
    %c0_i32_1 = arith.constant 0 : i32
    return %c0_i32, %c0_i32_0 : i32, i32
  }
  func.func @transform_5(%arg0: i32) -> (i32, i32) {
    %c0_i32 = arith.constant 0 : i32
    %c0_i32_0 = arith.constant 0 : i32
    %c0_i32_1 = arith.constant 0 : i32
    return %c0_i32, %c0_i32_0 : i32, i32
  }
  func.func @transform_6(%arg0: i32) -> (i32, i32) {
    %c0_i32 = arith.constant 0 : i32
    %c0_i32_0 = arith.constant 0 : i32
    %c0_i32_1 = arith.constant 0 : i32
    return %c0_i32, %c0_i32_0 : i32, i32
  }
  func.func @transform_7(%arg0: i32) -> (i32, i32) {
    %c0_i32 = arith.constant 0 : i32
    %c0_i32_0 = arith.constant 0 : i32
    %c0_i32_1 = arith.constant 0 : i32
    return %c0_i32, %c0_i32_0 : i32, i32
  }
  func.func @transform_8(%arg0: i32) -> (i32, i32) {
    %c0_i32 = arith.constant 0 : i32
    %c0_i32_0 = arith.constant 0 : i32
    %c0_i32_1 = arith.constant 0 : i32
    return %c0_i32, %c0_i32_0 : i32, i32
  }
  func.func @transform_9(%arg0: i32) -> (i32, i32) {
    %c0_i32 = arith.constant 0 : i32
    %c0_i32_0 = arith.constant 0 : i32
    %c0_i32_1 = arith.constant 0 : i32
    return %c0_i32, %c0_i32_0 : i32, i32
  }
  func.func @transform_10(%arg0: i32) -> (i32, i32, i32) {
    %c0_i32 = arith.constant 0 : i32
    %c0_i32_0 = arith.constant 0 : i32
    %c0_i32_1 = arith.constant 0 : i32
    return %arg0, %c0_i32, %c0_i32_0 : i32, i32, i32
  }
  func.func @transform_11(%arg0: i32) -> (i32, i32, i32) {
    %c0_i32 = arith.constant 0 : i32
    %c0_i32_0 = arith.constant 0 : i32
    %c0_i32_1 = arith.constant 0 : i32
    return %arg0, %c0_i32, %c0_i32_0 : i32, i32, i32
  }
  func.func @transform_12(%arg0: i32) -> (i32, i32, i32) {
    %c0_i32 = arith.constant 0 : i32
    %c0_i32_0 = arith.constant 0 : i32
    %c0_i32_1 = arith.constant 0 : i32
    return %arg0, %c0_i32, %c0_i32_0 : i32, i32, i32
  }
}

</mosaic_0001>

<bundles_post_ra>
// kernel: tpu_custom_call.1
= control target key start
LH: loop header
LB: loop body
LE: loop exit
PB: predicated region body
PF: predicated region fallthrough
CT: control target
= control target key end

     0   :  { %18 = vsyncpa [#allocation3], 0  ;;  %s3553_s0 = inlined_call_operand.vmem [shape: f32[2,64,256], index: 0, kind: input, shape index: {}]   ;;  %s3554_s1 = inlined_call_operand.hbm [shape: f32[64,64], index: 1, kind: input, shape index: {}]   ;;  %s3555_s2 = inlined_call_operand.vmem [shape: f32[64,1], index: 2, kind: input, shape index: {}]   ;;  %s3556_s3 = inlined_call_operand.vmem [shape: f32[64,1], index: 3, kind: input, shape index: {}]   ;;  %s3557_s4 = inlined_call_operand.hbm [shape: bf16[64,64], index: 4, kind: input, shape index: {}]   ;;  %s3558_s5 = inlined_call_operand.vmem [shape: f32[1,64], index: 5, kind: input, shape index: {}]   ;;  %s3559_s6 = inlined_call_operand.hbm [shape: bf16[64,64], index: 6, kind: input, shape index: {}]   ;;  %s3560_s7 = inlined_call_operand.vmem [shape: f32[64,1], index: 7, kind: input, shape index: {}]   ;;  %s3561_s8 = inlined_call_operand.hbm [shape: bf16[64,64], index: 8, kind: input, shape index: {}]   ;;  %s3562_s9 = inlined_call_operand.vmem [shape: f32[64,1], index: 9, kind: input, shape index: {}]   ;;  %s3563_s10 = inlined_call_operand.vmem [shape: bf16[2,256,64], index: 10, kind: output, shape index: {0}]   ;;  %s3564_s11 = inlined_call_operand.hbm [shape: bf16[2,64,256], index: 11, kind: output, shape index: {1}]   ;;  %s3565_s12 = inlined_call_operand.hbm [shape: bf16[2,64,256], index: 12, kind: output, shape index: {2}]  }
   0x1   :  { %19 = vsyncpa [#allocation6], 0 }
   0x2   :  { %20 = vsyncpa [#allocation9], 0 }
   0x3   :  { %21 = vsyncpa [#allocation4], 0 }
   0x4   :  { %23 = vsyncpa [#allocation4 + $0x1], 0 }
   0x5   :  { %24 = vsyncpa [#allocation12], 0 }
   0x6   :  { %26 = vsyncpa [#allocation12 + $0x1], 0  ;;  %s2915_s21 = smov 0   ;;  %s2917_s22 = smov 0  }
   0x7   :  { %s2919_s23 = smov 0   ;;  %s2921_s24 = smov 0  }
   0x8 LB: > { %3580 = sst [smem:[#allocation18_spill]] %s2831_s23  ;;  %s2936_s25 = sadd.s32 4294967295, %s2835_s24   ;;  %s2835_s24 = sphi %s2921_s24, %s3603_s24   ;;  %s2831_s23 = sphi %s2919_s23, %s3605_s23   ;;  %s2827_s22 = sphi %s2917_s22, %s3607_s22   ;;  %s2823_s21 = sphi %s2915_s21, %s3606_s21  }
   0x9   : > { %s2176_s26 = sadd.s32 4294967294, %s2835_s24   ;;  %s2940_s27 = sadd.s32 1, %s2835_s24  }
   0xa   : > { %3581 = sst [smem:[#allocation19_spill]] %s2940_s27  ;;  %s280_s28 = sadd.s32 1, %s2831_s23 }
   0xb   : > { %s277_s29 = ssub.s32 %s2835_s24, %s2940_s27  ;;  %p290_p0 = scmp.ne.s32.totalorder %s2831_s23, %s2827_s22 }
   0xc   : > { %p278_p1 = scmp.eq.s32.totalorder %s277_s29, 0  ;;  %p291_p2 = scmp.eq.s32.totalorder %s2936_s25, 1 }
   0xd   : > { %p296_p3 = scmp.ne.s32.totalorder %s2827_s22, %s2823_s21  ;;  %p297_p4 = scmp.eq.s32.totalorder %s2176_s26, 1 }
   0xe   : > { %s2951_s30 = scalar_select %p278_p1, %s2831_s23, %s280_s28  }
   0xf   : > { %p2953_p5 = por %p291_p2, %p290_p0  ;;  %p2957_p6 = por %p297_p4, %p296_p3 }
  0x10   : > { %3582 = sst [smem:[#allocation20_spill]] %s2951_s30  ;;  %p2177_p7 = scmp.ge.s32.totalorder %s2835_s24, 1 }
  0x11   : > { %s3584_s14 = scalar_select %p2957_p6, 1, 0 }
  0x12   : > { %p330_p8 = scmp.lt.s32.totalorder %s2835_s24, 3  ;;  %p3574_p9 = scmp.eq.s32.totalorder %s2936_s25, 0 }
  0x13   : > { %3585 = sst [smem:[#allocation21_spill]] %s3584_s14  ;;  %s2837_s16 = smov [#allocation5]  }
  0x14   : > { %p2964_p10 = pnand %p2177_p7, %p330_p8  ;;  %s361_s17 = sshll.u32 %s2837_s16, 4  ;;  %s362_s17 = int_to_ptr.vmem [resolvable:$true] %s361_s17 }
  0x15   : > { %s2838_s19 = smov [#allocation2]   ;;  %s2640_s26 = scalar_lea.vmem %s362_s17, 512 }
  0x16   : > { %p2527_p11 = pneg %p2964_p10  ;;  %s342_s20 = sshll.u32 %s2838_s19, 4  ;;  %s343_s20 = int_to_ptr.vmem [resolvable:$true] %s342_s20 }
  0x17   : > { %p2641_p0 = scmp.ne.s32.totalorder %s362_s17, %s2640_s26  ;;  %p2648_p3 = scmp.lt.s32.totalorder %s362_s17, %s362_s17 }
  0x18   : > { %p2972_p12 = pnand %p3574_p9, %p2527_p11  ;;  %p2649_p4 = scmp.lt.s32.totalorder %s2640_s26, %s2640_s26 }
  0x1a   : > { %p2631_p13 = pneg %p2972_p12  ;;  %p2650_p7 = por %p2649_p4, %p2648_p3 }
  0x1c   : > { %p2643_p1 = pnand %p2641_p0, %p2631_p13 }
  0x1e   : > { %p2644_p2 = pneg %p2643_p1 }
  0x20   : > { %p2651_p8 = pnand %p2650_p7, %p2644_p2 }
  0x22   : > { %2654 = shalt.err (!%p2651_p8)
}
  0x23   : > { %s3570_s28 = smov 64   ;;  %s3572_s29 = smov 4  }
  0x24   : > { %2533 = dma.hbm_to_vmem [thread:$0]  (!%p2972_p12), %s3557_s4, 512, %s362_s17, [#allocation6], %s3570_s28, %s3570_s28, %s3572_s29  }
  0x25   : > { %s2666_s30 = scalar_lea.vmem %s343_s20, 1024  ;;  %p2674_p2 = scmp.lt.s32.totalorder %s343_s20, %s343_s20 }
  0x26   : > { %p2667_p11 = scmp.ne.s32.totalorder %s343_s20, %s2666_s30  ;;  %p2675_p3 = scmp.lt.s32.totalorder %s2666_s30, %s2666_s30 }
  0x28   : > { %p2669_p0 = pnand %p2667_p11, %p2631_p13  ;;  %p2676_p4 = por %p2675_p3, %p2674_p2 }
  0x2a   : > { %p2670_p1 = pneg %p2669_p0 }
  0x2c   : > { %p2677_p7 = pnand %p2676_p4, %p2670_p1 }
  0x2e   : > { %2680 = shalt.err (!%p2677_p7)
}
  0x2f   : > { %s2841_s26 = smov 128   ;;  %s2842_s23 = smov 8  }
  0x30   : > { %2530 = dma.hbm_to_vmem [thread:$0]  (!%p2972_p12), %s3554_s1, 1024, %s343_s20, [#allocation3], %s2841_s26, %s2841_s26, %s2842_s23  }
  0x31   : > { %s2843_s17 = smov [#allocation7]   ;;  %s2844_s19 = smov [#allocation8]  }
  0x32   : > { %s377_s16 = sshll.u32 %s2843_s17, 4  ;;  %s393_s28 = sshll.u32 %s2844_s19, 4  ;;  %s378_s16 = int_to_ptr.vmem [resolvable:$true] %s377_s16  ;;  %s394_s28 = int_to_ptr.vmem [resolvable:$true] %s393_s28 }
  0x33   : > { %s2692_s29 = scalar_lea.vmem %s378_s16, 512  ;;  %p2700_p1 = scmp.lt.s32.totalorder %s378_s16, %s378_s16 }
  0x34   : > { %p2693_p8 = scmp.ne.s32.totalorder %s378_s16, %s2692_s29  ;;  %p2701_p2 = scmp.lt.s32.totalorder %s2692_s29, %s2692_s29 }
  0x36   : > { %p2695_p11 = pnand %p2693_p8, %p2631_p13  ;;  %p2702_p3 = por %p2701_p2, %p2700_p1 }
  0x38   : > { %p2696_p0 = pneg %p2695_p11 }
  0x3a   : > { %p2703_p4 = pnand %p2702_p3, %p2696_p0 }
  0x3c   : > { %2706 = shalt.err (!%p2703_p4)
}
  0x3d   : > { %s3588_s23 = smov 4   ;;  %s3589_s27 = smov 64  }
  0x3e   : > { %2536 = dma.hbm_to_vmem [thread:$0]  (!%p2972_p12), %s3559_s6, 512, %s378_s16, [#allocation6], %s3589_s27, %s3589_s27, %s3588_s23  }
  0x3f   : > { %s2718_s20 = scalar_lea.vmem %s394_s28, 512  ;;  %p2726_p9 = scmp.lt.s32.totalorder %s394_s28, %s394_s28 }
  0x40   : > { %p2719_p7 = scmp.ne.s32.totalorder %s394_s28, %s2718_s20  ;;  %p2727_p1 = scmp.lt.s32.totalorder %s2718_s20, %s2718_s20 }
  0x42   : > { %p2721_p8 = pnand %p2719_p7, %p2631_p13  ;;  %p2728_p0 = por %p2727_p1, %p2726_p9 }
  0x44   : > { %p2722_p11 = pneg %p2721_p8 }
  0x46   : > { %p2729_p2 = pnand %p2728_p0, %p2722_p11 }
  0x48   : > { %2732 = shalt.err (!%p2729_p2)
}
  0x49   : > { %2539 = dma.hbm_to_vmem [thread:$0]  (!%p2972_p12), %s3561_s8, 512, %s394_s28, [#allocation9], %s3589_s27, %s3589_s27, %s3588_s23  }
  0x4a   : > { %420 = sbr.rel (%p2964_p10) target bundleno = 996 (0x3e4), region = 60  ;;  %p3590_p13 = scmp.eq.s32.totalorder (!%p2964_p10), %s2936_s25, 0 }
  0x4f   : > { %2802 = dma.done.wait (%p3590_p13), [#allocation3], 1024   ;;  %p3591_p3 = pmov %p3590_p13 }
  0x51   : > { %2804 = vsyncadd (%p3591_p3), [#allocation3], 4294966272  ;;  %p3592_p9 = pmov %p3591_p3 }
  0x52   : > { %p3593_p4 = pmov %p3591_p3 }
  0x53   : > { %2806 = dma.done.wait (%p3592_p9), [#allocation6], 1024  }
  0x54   : > { %2808 = vsyncadd (%p3593_p4), [#allocation6], 4294966272  ;;  %p3594_p7 = pmov %p3591_p3 }
  0x55   : > { %p3595_p12 = pmov %p3591_p3 }
  0x56   : > { %2810 = dma.done.wait (%p3594_p7), [#allocation9], 512  }
  0x57   : > { %2812 = vsyncadd (%p3595_p12), [#allocation9], 4294966784  ;;  %p484_p10 = scmp.lt.s32.totalorder %s2936_s25, 1  ;;  %v575_v48 = vld [vmem:[#allocation2] sm:$0xff]  ;;  %vm583_vm0 = vcmask 523264   ;;  %v987_v50 = vld [vmem:[%s3556_s3 + $0x8] sm:$0xff] }
  0x58   : > { %2423 = vmatprep.mubr.msk.f32.mxu0 %vm583_vm0, %v575_v48  ;;  %2451 = vmatprep.mubr.msk.f32.mxu1 %vm583_vm0, %v575_v48  ;;  %v986_v49 = vld [vmem:[%s3556_s3] sm:$0xff]  ;;  %v2845_v51 = vmov 0   ;;  %v988_v52 = vld [vmem:[%s3556_s3 + $0x10] sm:$0xff]  ;;  %v989_v53 = vld [vmem:[%s3556_s3 + $0x18] sm:$0xff]  ;;  %s3330_s17 = sand.u32 1, %s2827_s22   ;;  %s3576_s27 = sshll.u32 %s2936_s25, 10 }
  0x59   : > { %s3035_s15 = scalar_select %p484_p10, %s2936_s25, 1  ;;  %2599 = vset.pattern.permute.xlu1 %v2845_v51  ;;  %2600 = vset.pattern.permute.xlu0 %v2845_v51  ;;  %v990_v54 = vld [vmem:[%s3556_s3 + $0x20] sm:$0xff] }
  0x5a   : > { %s3353_s20 = scalar_lea.hbm %s3564_s11, %s3576_s27  ;;  %s2846_s28 = smov [#allocation10]  }
  0x5b   : > { %s3575_s18 = sshll.u32 %s3035_s15, 7 }
  0x5c   : > { %s3043_s16 = scalar_lea.vmem %s3553_s0, %s3575_s18  ;;  %s2737_s18 = sshll.u32 %s2846_s28, 4  ;;  %s2738_s18 = int_to_ptr.vmem [resolvable:$false] %s2737_s18 }
  0x5d   : > { %v3046_v0 = vld [vmem:[%s3043_s16 + $0x70] sm:$0xff]  ;;  %v3049_v1 = vld [vmem:[%s3043_s16 + $0x78] sm:$0xff]  ;;  %v3060_v5 = vld [vmem:[%s3043_s16 + $0x60] sm:$0xff]  ;;  %s2739_s30 = scalar_lea.vmem %s2738_s18, 2048 }
  0x5e   : > { %v3052_v2 = vld [vmem:[%s3043_s16 + $0x50] sm:$0xff]  ;;  %v532_v3 = vadd.f32 %v3049_v1, %v3046_v0  ;;  %v3057_v4 = vld [vmem:[%s3043_s16 + $0x58] sm:$0xff]  ;;  %v3063_v6 = vld [vmem:[%s3043_s16 + $0x68] sm:$0xff]  ;;  %v547_v11 = vmul.f32 %v3060_v5, %v3060_v5  ;;  %v549_v20 = vmul.f32 %v3046_v0, %v3046_v0  ;;  %v550_v21 = vmul.f32 %v3049_v1, %v3049_v1 }
  0x5f   : > { %v526_v7 = vadd.f32 %v3057_v4, %v3052_v2  ;;  %v3068_v8 = vld [vmem:[%s3043_s16 + $0x40] sm:$0xff]  ;;  %v3071_v9 = vld [vmem:[%s3043_s16 + $0x48] sm:$0xff]  ;;  %v529_v10 = vadd.f32 %v3063_v6, %v3060_v5  ;;  %v548_v12 = vmul.f32 %v3063_v6, %v3063_v6  ;;  %v3082_v14 = vld [vmem:[%s3043_s16 + $0x30] sm:$0xff]  ;;  %v545_v17 = vmul.f32 %v3052_v2, %v3052_v2 }
  0x60   : > { %533 = vadd.xlane.f32.xlu0 %v532_v3  ;;  %v523_v13 = vadd.f32 %v3071_v9, %v3068_v8  ;;  %v3085_v15 = vld [vmem:[%s3043_s16 + $0x38] sm:$0xff]  ;;  %v546_v18 = vmul.f32 %v3057_v4, %v3057_v4  ;;  %v543_v23 = vmul.f32 %v3068_v8, %v3068_v8  ;;  %v544_v24 = vmul.f32 %v3071_v9, %v3071_v9  ;;  %v3102_v26 = vld [vmem:[%s3043_s16 + $0x20] sm:$0xff]  ;;  %v3105_v27 = vld [vmem:[%s3043_s16 + $0x28] sm:$0xff] }
  0x61   : > { %527 = vadd.xlane.f32.xlu1 %v526_v7  ;;  %v569_v16 = vadd.f32 %v548_v12, %v547_v11  ;;  %v520_v19 = vadd.f32 %v3085_v15, %v3082_v14  ;;  %v572_v25 = vadd.f32 %v550_v21, %v549_v20  ;;  %v541_v29 = vmul.f32 %v3082_v14, %v3082_v14  ;;  %v3114_v32 = vld [vmem:[%s3043_s16 + $0x10] sm:$0xff]  ;;  %v3117_v33 = vld [vmem:[%s3043_s16 + $0x18] sm:$0xff]  ;;  %v3126_v38 = vld [vmem:[%s3043_s16] sm:$0xff] }
  0x62   : > { %v566_v22 = vadd.f32 %v546_v18, %v545_v17  ;;  %v563_v28 = vadd.f32 %v544_v24, %v543_v23  ;;  %v542_v30 = vmul.f32 %v3085_v15, %v3085_v15  ;;  %v517_v31 = vadd.f32 %v3105_v27, %v3102_v26  ;;  %v3129_v39 = vld [vmem:[%s3043_s16 + $0x8] sm:$0xff]  ;;  %v579_v20 = vld [vmem:[#allocation2 + $0x20] sm:$0xff]  ;;  %v582_v23 = vld [vmem:[#allocation2 + $0x38] sm:$0xff]  ;;  %s3577_s16 = sshll.u32 %s3330_s17, 6 }
  0x63   : > { %v539_v35 = vmul.f32 %v3102_v26, %v3102_v26  ;;  %v540_v36 = vmul.f32 %v3105_v27, %v3105_v27  ;;  %v514_v37 = vadd.f32 %v3117_v33, %v3114_v32  ;;  %v537_v41 = vmul.f32 %v3114_v32, %v3114_v32  ;;  %v580_v21 = vld [vmem:[#allocation2 + $0x28] sm:$0xff]  ;;  %s3335_s19 = scalar_lea.vmem [#allocation10], %s3577_s16 }
  0x64   : > { %530 = vadd.xlane.f32.xlu0 %v529_v10  ;;  %v560_v34 = vadd.f32 %v542_v30, %v541_v29  ;;  %v538_v42 = vmul.f32 %v3117_v33, %v3117_v33  ;;  %v511_v43 = vadd.f32 %v3129_v39, %v3126_v38  ;;  %v535_v44 = vmul.f32 %v3126_v38, %v3126_v38  ;;  %v991_v24 = vld [vmem:[%s3556_s3 + $0x28] sm:$0xff]  ;;  %s2000_s23 = sshll.u32 %s3335_s19, 4  ;;  %s3346_s23 = int_to_ptr.vmem [resolvable:$true] %s2000_s23 }
  0x65   : > { %524 = vadd.xlane.f32.xlu1 %v523_v13  ;;  %v557_v40 = vadd.f32 %v540_v36, %v539_v35  ;;  %v536_v45 = vmul.f32 %v3129_v39, %v3129_v39  ;;  %v576_v13 = vld [vmem:[#allocation2 + $0x8] sm:$0xff]  ;;  %s2733_s26 = scalar_lea.vmem %s3346_s23, 1024  ;;  %p2740_p0 = scmp.lt.s32.totalorder %s3346_s23, %s2738_s18 }
  0x66   : > { %v554_v46 = vadd.f32 %v538_v42, %v537_v41  ;;  %p2734_p8 = scmp.ne.s32.totalorder %s3346_s23, %s2733_s26  ;;  %p2741_p2 = scmp.lt.s32.totalorder %s2739_s30, %s2733_s26 }
  0x67   : > { %v551_v47 = vadd.f32 %v536_v45, %v535_v44 }
  0x68   : > { %570 = vadd.xlane.f32.xlu0 %v569_v16  ;;  %v577_v16 = vld [vmem:[#allocation2 + $0x10] sm:$0xff]  ;;  %p2735_p11 = pnand %p2734_p8, %p2953_p5  ;;  %p2742_p13 = por %p2741_p2, %p2740_p0 }
  0x69   : > { %521 = vadd.xlane.f32.xlu1 %v520_v19  ;;  %v578_v19 = vld [vmem:[#allocation2 + $0x18] sm:$0xff] }
  0x6a   : > { %p2736_p1 = pneg %p2735_p11 }
  0x6c   : > { %567 = vadd.xlane.f32.xlu0 %v566_v22  ;;  %v581_v22 = vld [vmem:[#allocation2 + $0x30] sm:$0xff]  ;;  %p2743_p3 = pnand %p2742_p13, %p2736_p1 }
  0x6d   : > { %573 = vadd.xlane.f32.xlu1 %v572_v25 }
  0x70   : > { %564 = vadd.xlane.f32.xlu0 %v563_v28 }
  0x71   : > { %518 = vadd.xlane.f32.xlu1 %v517_v31 }
  0x74   : > { %561 = vadd.xlane.f32.xlu0 %v560_v34 }
  0x75   : > { %515 = vadd.xlane.f32.xlu1 %v514_v37 }
  0x78   : > { %558 = vadd.xlane.f32.xlu0 %v557_v40 }
  0x79   : > { %512 = vadd.xlane.f32.xlu1 %v511_v43 }
  0x7c   : > { %555 = vadd.xlane.f32.xlu0 %v554_v46 }
  0x7d   : > { %552 = vadd.xlane.f32.xlu1 %v551_v47 }
  0x8e   : > { %996 = vperm.xlu1 %2599, %v986_v49  }
  0x92   : > { %1001 = vperm.xlu0 %2600, %v987_v50   ;;  %1006 = vperm.xlu1 %2599, %v988_v52  }
  0x96   : > { %1011 = vperm.xlu0 %2600, %v989_v53   ;;  %1016 = vperm.xlu1 %2599, %v990_v54  }
  0x9a   : > { %1021 = vperm.xlu0 %2600, %v991_v24  }
  0xe9   : > { %v534_v55 = vpop.xlane.xlu0 %533 }
  0xea   : > { %v528_v56 = vpop.xlane.xlu1 %527  ;;  %2407 = vmatprep.subr.mxu0 %v534_v55 }
  0xeb   : > { %2408 = vmatpush3.msra.mxu0 %v534_v55 }
  0xed   : > { %v531_v57 = vpop.xlane.xlu0 %530 }
  0xee   : > { %v525_v58 = vpop.xlane.xlu1 %524  ;;  %2409 = vmatprep.subr.mxu0 %v531_v57 }
  0xef   : > { %2410 = vmatpush3.msra.mxu0 %v531_v57 }
  0xf0   : > { %2411 = vmatprep.subr.mxu0 %v528_v56 }
  0xf1   : > { %v571_v59 = vpop.xlane.xlu0 %570  ;;  %2412 = vmatpush3.msra.mxu0 %v528_v56 }
  0xf2   : > { %v522_v60 = vpop.xlane.xlu1 %521  ;;  %2413 = vmatprep.subr.mxu0 %v525_v58 }
  0xf3   : > { %2414 = vmatpush3.msra.mxu0 %v525_v58 }
  0xf4   : > { %2415 = vmatprep.subr.mxu0 %v522_v60 }
  0xf5   : > { %v568_v61 = vpop.xlane.xlu0 %567  ;;  %2416 = vmatpush3.msra.mxu0 %v522_v60 }
  0xf6   : > { %v574_v62 = vpop.xlane.xlu1 %573 }
  0xf7   : > { %2435 = vmatprep.subr.mxu1 %v574_v62 }
  0xf8   : > { %2436 = vmatpush3.msra.mxu1 %v574_v62 }
  0xf9   : > { %2437 = vmatprep.subr.mxu1 %v571_v59  ;;  %v565_v63 = vpop.xlane.xlu0 %564 }
  0xfa   : > { %2438 = vmatpush3.msra.mxu1 %v571_v59  ;;  %v519_v3 = vpop.xlane.xlu1 %518 }
  0xfb   : > { %2439 = vmatprep.subr.mxu1 %v568_v61  ;;  %2417 = vmatprep.subr.mxu0 %v519_v3 }
  0xfc   : > { %2440 = vmatpush3.msra.mxu1 %v568_v61  ;;  %2418 = vmatpush3.msra.mxu0 %v519_v3 }
  0xfd   : > { %2441 = vmatprep.subr.mxu1 %v565_v63  ;;  %v562_v7 = vpop.xlane.xlu0 %561 }
  0xfe   : > { %2442 = vmatpush3.msra.mxu1 %v565_v63  ;;  %v516_v10 = vpop.xlane.xlu1 %515 }
  0xff   : > { %2443 = vmatprep.subr.mxu1 %v562_v7  ;;  %2419 = vmatprep.subr.mxu0 %v516_v10 }
 0x100   : > { %2444 = vmatpush3.msra.mxu1 %v562_v7  ;;  %2420 = vmatpush3.msra.mxu0 %v516_v10 }
 0x101   : > { %v559_v11 = vpop.xlane.xlu0 %558 }
 0x102   : > { %v513_v12 = vpop.xlane.xlu1 %512  ;;  %2445 = vmatprep.subr.mxu1 %v559_v11 }
 0x103   : > { %2421 = vmatprep.subr.mxu0 %v513_v12  ;;  %2446 = vmatpush3.msra.mxu1 %v559_v11 }
 0x104   : > { %2422 = vmatpush3.msra.mxu0 %v513_v12 }
 0x105   : > { %2424 = vmatmul.mubr.msk.f32.vlgmr.msra.gmra.mxu0 %vm583_vm0, %v576_v13  ;;  %v556_v17 = vpop.xlane.xlu0 %555 }
 0x106   : > { %2447 = vmatprep.subr.mxu1 %v556_v17  ;;  %2426 = vmatprep.mubr.msk.f32.mxu0 %vm583_vm0, %v577_v16  ;;  %v553_v18 = vpop.xlane.xlu1 %552 }
 0x107   : > { %2448 = vmatpush3.msra.mxu1 %v556_v17 }
 0x108   : > { %2449 = vmatprep.subr.mxu1 %v553_v18 }
 0x109   : > { %2427 = vmatmul.mubr.msk.f32.gmra.mxu0 %vm583_vm0, %v578_v19  ;;  %2450 = vmatpush3.msra.mxu1 %v553_v18 }
 0x10a   : > { %2452 = vmatmul.mubr.msk.f32.vlgmr.msra.gmra.mxu1 %vm583_vm0, %v576_v13  ;;  %2429 = vmatprep.mubr.msk.f32.mxu0 %vm583_vm0, %v579_v20 }
 0x10b   : > { %2454 = vmatprep.mubr.msk.f32.mxu1 %vm583_vm0, %v577_v16 }
 0x10d   : > { %2430 = vmatmul.mubr.msk.f32.gmra.mxu0 %vm583_vm0, %v580_v21 }
 0x10e   : > { %2455 = vmatmul.mubr.msk.f32.gmra.mxu1 %vm583_vm0, %v578_v19  ;;  %2432 = vmatprep.mubr.msk.f32.mxu0 %vm583_vm0, %v581_v22 }
 0x10f   : > { %2457 = vmatprep.mubr.msk.f32.mxu1 %vm583_vm0, %v579_v20 }
 0x111   : > { %2433 = vmatmul.mubr.msk.f32.gmra.mxu0 %vm583_vm0, %v582_v23 }
 0x112   : > { %2458 = vmatmul.mubr.msk.f32.gmra.mxu1 %vm583_vm0, %v580_v21 }
 0x113   : > { %2460 = vmatprep.mubr.msk.f32.mxu1 %vm583_vm0, %v581_v22 }
 0x116   : > { %2461 = vmatmul.mubr.msk.f32.gmra.mxu1 %vm583_vm0, %v582_v23 }
 0x117   : > { %1498 = vmatprep.mubr.bf16.mxu1 %v2845_v51 }
 0x1c5   : > { %v2425_v25 = vpop.f32.mrf.mxu0 }
 0x1c6   : > { %865 = vperm.xlu1 %2599, %v2425_v25   ;;  %v819_v28 = vmul.f32 %v2425_v25, %v2425_v25  ;;  %v915_v25 = vld [vmem:[%s3555_s2 + $0x8] sm:$0xff] }
 0x1c7   : > { %v674_v29 = vpop.f32.mrf.mxu0 }
 0x1c8   : > { %860 = vperm.xlu0 %2600, %v674_v29   ;;  %v818_v34 = vmul.f32 %v674_v29, %v674_v29 }
 0x1c9   : > { %v2428_v30 = vpop.f32.mrf.mxu0 }
 0x1ca   : > { %875 = vperm.xlu1 %2599, %v2428_v30   ;;  %v2453_v31 = vpop.f32.mrf.mxu1  ;;  %v821_v35 = vmul.f32 %v2428_v30, %v2428_v30 }
 0x1cb   : > { %v827_v36 = vsub.f32 %v2453_v31, %v819_v28  ;;  %v684_v37 = vpop.f32.mrf.mxu0 }
 0x1cc   : > { %v779_v40 = vpop.f32.mrf.mxu1  ;;  %v820_v44 = vmul.f32 %v684_v37, %v684_v37 }
 0x1cd   : > { %v835_v41 = vmax.f32 %v827_v36, 0.0  ;;  %v826_v42 = vsub.f32 %v779_v40, %v818_v34  ;;  %v2431_v43 = vpop.f32.mrf.mxu0  ;;  %v914_v34 = vld [vmem:[%s3555_s2] sm:$0xff] }
 0x1ce   : > { %870 = vperm.xlu1 %2599, %v684_v37   ;;  %v2456_v45 = vpop.f32.mrf.mxu1  ;;  %v823_v49 = vmul.f32 %v2431_v43, %v2431_v43 }
 0x1cf   : > { %v843_v46 = vadd.f32 1e-06, %v835_v41  ;;  %v834_v47 = vmax.f32 %v826_v42, 0.0  ;;  %v829_v48 = vsub.f32 %v2456_v45, %v821_v35  ;;  %v694_v50 = vpop.f32.mrf.mxu0  ;;  %v917_v35 = vld [vmem:[%s3555_s2 + $0x18] sm:$0xff]  ;;  %v916_v42 = vld [vmem:[%s3555_s2 + $0x10] sm:$0xff] }
 0x1d0   : > { %v789_v52 = vpop.f32.mrf.mxu1  ;;  %v822_v53 = vmul.f32 %v694_v50, %v694_v50 }
 0x1d1   : > { %2613 = vrsqrt.f32 %v843_v46  ;;  %v842_v54 = vadd.f32 1e-06, %v834_v47  ;;  %v837_v55 = vmax.f32 %v829_v48, 0.0  ;;  %v828_v56 = vsub.f32 %v789_v52, %v820_v44  ;;  %v2434_v57 = vpop.f32.mrf.mxu0  ;;  %v918_v48 = vld [vmem:[%s3555_s2 + $0x20] sm:$0xff] }
 0x1d2   : > { %885 = vperm.xlu1 %2599, %v2431_v43   ;;  %v2459_v58 = vpop.f32.mrf.mxu1  ;;  %v825_v59 = vmul.f32 %v2434_v57, %v2434_v57  ;;  %895 = vperm.xlu0 %2600, %v2434_v57   ;;  %v919_v43 = vld [vmem:[%s3555_s2 + $0x28] sm:$0xff] }
 0x1d3   : > { %2615 = vrsqrt.f32 %v842_v54  ;;  %v845_v60 = vadd.f32 1e-06, %v837_v55  ;;  %v836_v61 = vmax.f32 %v828_v56, 0.0  ;;  %v831_v62 = vsub.f32 %v2459_v58, %v823_v49  ;;  %v704_v63 = vpop.f32.mrf.mxu0  ;;  %v921_v49 = vld [vmem:[%s3555_s2 + $0x38] sm:$0xff]  ;;  %v920_v55 = vld [vmem:[%s3555_s2 + $0x30] sm:$0xff] }
 0x1d4   : > { %v799_v3 = vpop.f32.mrf.mxu1  ;;  %v824_v7 = vmul.f32 %v704_v63, %v704_v63  ;;  %v993_v56 = vld [vmem:[%s3556_s3 + $0x38] sm:$0xff]  ;;  %v992_v58 = vld [vmem:[%s3556_s3 + $0x30] sm:$0xff] }
 0x1d5   : > { %2617 = vrsqrt.f32 %v845_v60  ;;  %v844_v10 = vadd.f32 1e-06, %v836_v61  ;;  %v839_v11 = vmax.f32 %v831_v62, 0.0  ;;  %v830_v12 = vsub.f32 %v799_v3, %v822_v53  ;;  %v997_v61 = vpop.permute.xlu1 %996  ;;  %v2609_v62 = vld [vmem:[#allocation5 + $0x10] sm:$0xff]  }
 0x1d6   : > { %880 = vperm.xlu1 %2599, %v694_v50   ;;  %v2462_v13 = vpop.f32.mrf.mxu1  ;;  %v1180_v3 = vsel %vm583_vm0, %v2609_v62, 0 }
 0x1d7   : > { %2619 = vrsqrt.f32 %v844_v10  ;;  %v847_v16 = vadd.f32 1e-06, %v839_v11  ;;  %v838_v17 = vmax.f32 %v830_v12, 0.0  ;;  %v833_v18 = vsub.f32 %v2462_v13, %v825_v59  ;;  %v2607_v59 = vld [vmem:[#allocation5 + $0x18] sm:$0xff]   ;;  %v2611_v10 = vld [vmem:[#allocation5 + $0x8] sm:$0xff]   ;;  %v2612_v11 = vld [vmem:[#allocation5] sm:$0xff]  }
 0x1d8   : > { %v809_v19 = vpop.f32.mrf.mxu1  ;;  %2503 = vmatprep.subr.msk.bf16.mxu0 %vm583_vm0, %v2607_v59  ;;  %v1183_v60 = vsel %vm583_vm0, %v2607_v59, 0  ;;  %v1177_v12 = vsel %vm583_vm0, %v2611_v10, 0 }
 0x1d9   : > { %2621 = vrsqrt.f32 %v847_v16  ;;  %v846_v20 = vadd.f32 1e-06, %v838_v17  ;;  %v841_v21 = vmax.f32 %v833_v18, 0.0  ;;  %v832_v22 = vsub.f32 %v809_v19, %v824_v7  ;;  %2464 = vmatpush3.bf16.xpose.msra.mxu0 %v1183_v60  ;;  %v1002_v18 = vpop.permute.xlu0 %1001 }
 0x1da   : > { %890 = vperm.xlu1 %2599, %v704_v63   ;;  %v1007_v63 = vpop.permute.xlu1 %1006  ;;  %2504 = vmatprep.subr.msk.bf16.mxu0 %vm583_vm0, %v2609_v62  ;;  %v1174_v17 = vsel %vm583_vm0, %v2612_v11, 0 }
 0x1db   : > { %2623 = vrsqrt.f32 %v846_v20  ;;  %v849_v23 = vadd.f32 1e-06, %v841_v21  ;;  %v840_v24 = vmax.f32 %v832_v22, 0.0 }
 0x1dd   : > { %2625 = vrsqrt.f32 %v849_v23  ;;  %v848_v28 = vadd.f32 1e-06, %v840_v24  ;;  %v1012_v20 = vpop.permute.xlu0 %1011 }
 0x1de   : > { %v2614_v29 = vpop.eup %2613  ;;  %v3212_v7 = vpop.permute.xlu1 %1016 }
 0x1df   : > { %2627 = vrsqrt.f32 %v848_v28  ;;  %v923_v30 = vmul.f32 %v2614_v29, %v915_v25 }
 0x1e0   : > { %v2616_v31 = vpop.eup %2615 }
 0x1e1   : > { %937 = vperm.xlu1 %2599, %v923_v30   ;;  %v922_v37 = vmul.f32 %v2616_v31, %v914_v34  ;;  %2466 = vmatpush3.bf16.xpose.msra.mxu0 %v1180_v3  ;;  %v1022_v22 = vpop.permute.xlu0 %1021 }
 0x1e2   : > { %v2618_v36 = vpop.eup %2617  ;;  %2505 = vmatprep.subr.msk.bf16.mxu0 %vm583_vm0, %v2611_v10 }
 0x1e3   : > { %v925_v40 = vmul.f32 %v2618_v36, %v917_v35 }
 0x1e4   : > { %v2620_v41 = vpop.eup %2619 }
 0x1e5   : > { %932 = vperm.xlu1 %2599, %v922_v37   ;;  %947 = vperm.xlu0 %2600, %v925_v40   ;;  %v924_v45 = vmul.f32 %v2620_v41, %v916_v42 }
 0x1e6   : > { %v2622_v44 = vpop.eup %2621 }
 0x1e7   : > { %v927_v46 = vmul.f32 %v2622_v44, %v919_v43 }
 0x1e8   : > { %v2624_v47 = vpop.eup %2623 }
 0x1e9   : > { %942 = vperm.xlu1 %2599, %v924_v45   ;;  %957 = vperm.xlu0 %2600, %v927_v46   ;;  %v926_v52 = vmul.f32 %v2624_v47, %v918_v48 }
 0x1ea   : > { %v2626_v50 = vpop.eup %2625  ;;  %2468 = vmatpush3.bf16.xpose.msra.mxu0 %v1177_v12 }
 0x1eb   : > { %v929_v53 = vmul.f32 %v2626_v50, %v921_v49  ;;  %2506 = vmatprep.subr.msk.bf16.mxu0 %vm583_vm0, %v2612_v11 }
 0x1ec   : > { %v2628_v54 = vpop.eup %2627 }
 0x1ed   : > { %952 = vperm.xlu1 %2599, %v926_v52   ;;  %967 = vperm.xlu0 %2600, %v929_v53   ;;  %v928_v57 = vmul.f32 %v2628_v54, %v920_v55 }
 0x1f1   : > { %1031 = vperm.xlu0 %2600, %v993_v56   ;;  %962 = vperm.xlu1 %2599, %v928_v57  }
 0x1f2   : > { %2470 = vmatpush3.bf16.xpose.msra.mxu0 %v1174_v17 }
 0x1f5   : > { %1026 = vperm.xlu1 %2599, %v992_v58  }
 0x241   : > { %v866_v13 = vpop.permute.xlu1 %865 }
 0x242   : > { %v900_v30 = vsub.f32 %v3114_v32, %v866_v13  ;;  %v901_v31 = vsub.f32 %v3117_v33, %v866_v13 }
 0x243   : > { %v861_v24 = vpop.permute.xlu0 %860 }
 0x244   : > { %v898_v34 = vsub.f32 %v3126_v38, %v861_v24  ;;  %v899_v35 = vsub.f32 %v3129_v39, %v861_v24 }
 0x245   : > { %v876_v16 = vpop.permute.xlu1 %875 }
 0x246   : > { %v904_v36 = vsub.f32 %v3082_v14, %v876_v16  ;;  %v905_v43 = vsub.f32 %v3085_v15, %v876_v16 }
 0x249   : > { %v871_v19 = vpop.permute.xlu1 %870 }
 0x24a   : > { %v902_v46 = vsub.f32 %v3102_v26, %v871_v19  ;;  %v903_v32 = vsub.f32 %v3105_v27, %v871_v19 }
 0x24d   : > { %v886_v21 = vpop.permute.xlu1 %885  ;;  %v896_v28 = vpop.permute.xlu0 %895 }
 0x24e   : > { %v908_v52 = vsub.f32 %v3052_v2, %v886_v21  ;;  %v909_v15 = vsub.f32 %v3057_v4, %v886_v21 }
 0x251   : > { %v881_v23 = vpop.permute.xlu1 %880 }
 0x252   : > { %v906_v60 = vsub.f32 %v3068_v8, %v881_v23 }
 0x255   : > { %v3218_v25 = vpop.permute.xlu1 %890 }
 0x256   : > { %v910_v19 = vsub.f32 %v3060_v5, %v3218_v25  ;;  %v2601_v5 = vld [vmem:[#allocation7] sm:$0xff]  }
 0x25c   : > { %v938_v29 = vpop.permute.xlu1 %937 }
 0x25d   : > { %v972_v37 = vmul.f32 %v938_v29, %v900_v30  ;;  %v973_v40 = vmul.f32 %v938_v29, %v901_v31 }
 0x25f   : > { %v1036_v49 = vadd.f32 %v1002_v18, %v972_v37  ;;  %v1037_v39 = vadd.f32 %v1002_v18, %v973_v40  ;;  %v913_v18 = vsub.f32 %v3049_v1, %v896_v28  ;;  %v1388_v37 = vld [vmem:[%s3560_s7 + $0x10] sm:$0xff]  ;;  %v1386_v40 = vld [vmem:[%s3560_s7] sm:$0xff] }
 0x260   : > { %v948_v41 = vpop.permute.xlu0 %947  ;;  %v933_v42 = vpop.permute.xlu1 %932 }
 0x261   : > { %v970_v44 = vmul.f32 %v933_v42, %v898_v34  ;;  %v971_v45 = vmul.f32 %v933_v42, %v899_v35  ;;  %v976_v47 = vmul.f32 %v948_v41, %v904_v36  ;;  %v977_v33 = vmul.f32 %v948_v41, %v905_v43  ;;  %v1390_v41 = vld [vmem:[%s3560_s7 + $0x20] sm:$0xff]  ;;  %v1389_v42 = vld [vmem:[%s3560_s7 + $0x18] sm:$0xff]  ;;  %v2603_v43 = vld [vmem:[#allocation7 + $0x10] sm:$0xff]  }
 0x263   : > { %v1034_v48 = vadd.f32 %v997_v61, %v970_v44  ;;  %v1035_v38 = vadd.f32 %v997_v61, %v971_v45  ;;  %v1040_v55 = vadd.f32 %v1012_v20, %v976_v47  ;;  %v1041_v57 = vadd.f32 %v1012_v20, %v977_v33  ;;  %v1392_v44 = vld [vmem:[%s3560_s7 + $0x30] sm:$0xff]  ;;  %v1391_v45 = vld [vmem:[%s3560_s7 + $0x28] sm:$0xff]  ;;  %v1393_v47 = vld [vmem:[%s3560_s7 + $0x38] sm:$0xff] }
 0x264   : > { %v958_v50 = vpop.permute.xlu0 %957  ;;  %v943_v14 = vpop.permute.xlu1 %942  ;;  %v907_v61 = vsub.f32 %v3071_v9, %v881_v23  ;;  %v912_v9 = vsub.f32 %v3046_v0, %v896_v28  ;;  %v911_v20 = vsub.f32 %v3063_v6, %v3218_v25  ;;  %v1387_v6 = vld [vmem:[%s3560_s7 + $0x8] sm:$0xff]  ;;  %v1549_v33 = vld [vmem:[%s3562_s9 + $0x10] sm:$0xff] }
 0x265   : > { %v974_v53 = vmul.f32 %v943_v14, %v902_v46  ;;  %v975_v54 = vmul.f32 %v943_v14, %v903_v32  ;;  %v3230_v56 = vpack.c.bf16 %v1037_v39, %v1035_v38  ;;  %v3232_v26 = vpack.c.bf16 %v1036_v49, %v1034_v48  ;;  %v2602_v25 = vld [vmem:[#allocation7 + $0x8] sm:$0xff]   ;;  %v1547_v46 = vld [vmem:[%s3562_s9] sm:$0xff]  ;;  %v2604_v32 = vld [vmem:[#allocation7 + $0x18] sm:$0xff]  }
 0x266   : > { %v980_v27 = vmul.f32 %v958_v50, %v908_v52  ;;  %v981_v62 = vmul.f32 %v958_v50, %v909_v15  ;;  %v1548_v48 = vld [vmem:[%s3562_s9 + $0x8] sm:$0xff]  ;;  %v1551_v38 = vld [vmem:[%s3562_s9 + $0x20] sm:$0xff]  ;;  %v1550_v49 = vld [vmem:[%s3562_s9 + $0x18] sm:$0xff] }
 0x267   : > { %v1038_v58 = vadd.f32 %v1007_v63, %v974_v53  ;;  %v1039_v59 = vadd.f32 %v1007_v63, %v975_v54  ;;  %1089 = vxpose.xlu0.c.b16.start [1/4] (short) %v3230_v56, 128  ;;  %1073 = vxpose.xlu1.c.b16.start [1/4] (short) %v3232_v26, 128  ;;  %v2605_v39 = vld [vmem:[#allocation8] sm:$0xff]   ;;  %v1553_v50 = vld [vmem:[%s3562_s9 + $0x30] sm:$0xff]  ;;  %v1552_v14 = vld [vmem:[%s3562_s9 + $0x28] sm:$0xff] }
 0x268   : > { %v968_v2 = vpop.permute.xlu0 %967  ;;  %v953_v4 = vpop.permute.xlu1 %952  ;;  %v1044_v13 = vadd.f32 %v1022_v22, %v980_v27  ;;  %v1045_v16 = vadd.f32 %v1022_v22, %v981_v62  ;;  %v1554_v52 = vld [vmem:[%s3562_s9 + $0x38] sm:$0xff]  ;;  %v2606_v53 = vld [vmem:[#allocation8 + $0x8] sm:$0xff]   ;;  %v2608_v54 = vld [vmem:[#allocation8 + $0x10] sm:$0xff]  }
 0x269   : > { %v1052_v3 = vpack.c.bf16 %v1040_v55, %v1038_v58  ;;  %v1053_v10 = vpack.c.bf16 %v1041_v57, %v1039_v59  ;;  %v978_v11 = vmul.f32 %v953_v4, %v906_v60  ;;  %v979_v12 = vmul.f32 %v953_v4, %v907_v61  ;;  %v2610_v15 = vld [vmem:[#allocation8 + $0x18] sm:$0xff]  }
 0x26a   : > { %v984_v24 = vmul.f32 %v968_v2, %v912_v9  ;;  %v985_v29 = vmul.f32 %v968_v2, %v913_v18 }
 0x26b   : > { %v1042_v17 = vadd.f32 %v3212_v7, %v978_v11  ;;  %v1043_v63 = vadd.f32 %v3212_v7, %v979_v12  ;;  %1090 = vxpose.xlu0.c.b16.cont [2/4] (short) %v1053_v10, 128  ;;  %1074 = vxpose.xlu1.c.b16.cont [2/4] (short) %v1052_v3, 128 }
 0x26c   : > { %v963_v8 = vpop.permute.xlu1 %962  ;;  %v1032_v22 = vpop.permute.xlu0 %1031 }
 0x26d   : > { %v1054_v21 = vpack.c.bf16 %v1044_v13, %v1042_v17  ;;  %v1055_v23 = vpack.c.bf16 %v1045_v16, %v1043_v63  ;;  %v982_v30 = vmul.f32 %v963_v8, %v910_v19  ;;  %v983_v7 = vmul.f32 %v963_v8, %v911_v20 }
 0x26e   : > { %v1048_v34 = vadd.f32 %v1032_v22, %v984_v24  ;;  %v1049_v0 = vadd.f32 %v1032_v22, %v985_v29 }
 0x26f   : > { %1091 = vxpose.xlu0.c.b16.cont [3/4] (short) %v1055_v23, 128  ;;  %1075 = vxpose.xlu1.c.b16.cont [3/4] (short) %v1054_v21, 128 }
 0x270   : > { %v1027_v31 = vpop.permute.xlu1 %1026 }
 0x271   : > { %v1046_v35 = vadd.f32 %v1027_v31, %v982_v30  ;;  %v1047_v1 = vadd.f32 %v1027_v31, %v983_v7 }
 0x273   : > { %v1056_v28 = vpack.c.bf16 %v1048_v34, %v1046_v35  ;;  %v1057_v36 = vpack.c.bf16 %v1049_v0, %v1047_v1 }
 0x275   : > { %1092 = vxpose.xlu0.c.b16.end [4/4] (short) %v1057_v36, 128  ;;  %1474 = vmatprep.subr.bf16.mxu1 %v1057_v36 }
 0x276   : > { %1076 = vxpose.xlu1.c.b16.end [4/4] (short) %v1056_v28, 128  ;;  %1475 = vmatpush1.bf16.msra.mxu1 %v1056_v28 }
 0x277   : > { %1476 = vmatprep.subr.bf16.mxu1 %v1055_v23 }
 0x27a   : > { %1477 = vmatpush1.bf16.msra.mxu1 %v1054_v21 }
 0x27b   : > { %1478 = vmatprep.subr.bf16.mxu1 %v1053_v10 }
 0x27e   : > { %1479 = vmatpush1.bf16.msra.mxu1 %v1052_v3 }
 0x27f   : > { %1480 = vmatprep.subr.bf16.mxu1 %v3230_v56 }
 0x282   : > { %1481 = vmatpush1.bf16.msra.mxu1 %v3232_v26 }
 0x283   : > { %1635 = vmatprep.subr.bf16.mxu1 %v1057_v36 }
 0x285   : > { %2235 = vmatmul.mubr.msk.bf16.vlgmr.msra.gmra.mxu1 %vm583_vm0, %v2601_v5 }
 0x286   : > { %1636 = vmatpush1.bf16.msra.mxu1 %v1056_v28  ;;  %1508 = vmatprep.mubr.bf16.mxu1 %v2845_v51 }
 0x287   : > { %1637 = vmatprep.subr.bf16.mxu1 %v1055_v23 }
 0x28a   : > { %1401 = vperm.xlu1 %2599, %v1387_v6   ;;  %1638 = vmatpush1.bf16.msra.mxu1 %v1054_v21 }
 0x28b   : > { %1639 = vmatprep.subr.bf16.mxu1 %v1053_v10 }
 0x28d   : > { %2236 = vmatmul.mubr.msk.bf16.gmra.mxu1 %vm583_vm0, %v2602_v25 }
 0x28e   : > { %1406 = vperm.xlu1 %2599, %v1388_v37   ;;  %1396 = vperm.xlu0 %2600, %v1386_v40  }
 0x28f   : > { %1640 = vmatpush1.bf16.msra.mxu1 %v1052_v3  ;;  %1518 = vmatprep.mubr.bf16.mxu1 %v2845_v51 }
 0x290   : > { %1641 = vmatprep.subr.bf16.mxu1 %v3230_v56 }
 0x292   : > { %1416 = vperm.xlu1 %2599, %v1390_v41   ;;  %1411 = vperm.xlu0 %2600, %v1389_v42  }
 0x293   : > { %1642 = vmatpush1.bf16.msra.mxu1 %v3232_v26 }
 0x295   : > { %2237 = vmatmul.mubr.msk.bf16.gmra.mxu1 %vm583_vm0, %v2603_v43 }
 0x296   : > { %1426 = vperm.xlu1 %2599, %v1392_v44   ;;  %1421 = vperm.xlu0 %2600, %v1391_v45  }
 0x297   : > { %1528 = vmatprep.mubr.bf16.mxu1 %v2845_v51 }
 0x29a   : > { %1557 = vperm.xlu1 %2599, %v1547_v46   ;;  %1431 = vperm.xlu0 %2600, %v1393_v47  }
 0x29d   : > { %2238 = vmatmul.mubr.msk.bf16.gmra.mxu1 %vm583_vm0, %v2604_v32 }
 0x29e   : > { %1567 = vperm.xlu1 %2599, %v1549_v33   ;;  %1562 = vperm.xlu0 %2600, %v1548_v48  }
 0x29f   : > { %1659 = vmatprep.mubr.bf16.mxu1 %v2845_v51 }
 0x2a2   : > { %1577 = vperm.xlu1 %2599, %v1551_v38   ;;  %1572 = vperm.xlu0 %2600, %v1550_v49  }
 0x2a5   : > { %2243 = vmatmul.mubr.msk.bf16.vlgmr.msra.gmra.mxu1 %vm583_vm0, %v2605_v39 }
 0x2a6   : > { %1587 = vperm.xlu1 %2599, %v1553_v50   ;;  %1582 = vperm.xlu0 %2600, %v1552_v14  }
 0x2a7   : > { %1669 = vmatprep.mubr.bf16.mxu1 %v2845_v51 }
 0x2aa   : > { %1592 = vperm.xlu0 %2600, %v1554_v52  }
 0x2ad   : > { %2244 = vmatmul.mubr.msk.bf16.gmra.mxu1 %vm583_vm0, %v2606_v53 }
 0x2ae   : > { %1679 = vmatprep.mubr.bf16.mxu1 %v2845_v51 }
 0x2b5   : > { %2245 = vmatmul.mubr.msk.bf16.gmra.mxu1 %vm583_vm0, %v2608_v54 }
 0x2b6   : > { %1689 = vmatprep.mubr.bf16.mxu1 %v2845_v51 }
 0x2bd   : > { %2246 = vmatmul.mubr.msk.bf16.gmra.mxu1 %vm583_vm0, %v2610_v15 }
 0x2cb   : > { %v1097_v58 = vpop.trf.xlu0 }
 0x2cc   : > { %v1081_v55 = vpop.trf.xlu1 }
 0x2cd   : > { %2471 = vmatprep.mubr.msk.bf16.mxu0 %vm583_vm0, %v1081_v55 }
 0x2cf   : > { %v1098_v59 = vpop.trf.xlu0 }
 0x2d0   : > { %v1082_v56 = vpop.trf.xlu1 }
 0x2d1   : > { %2472 = vmatmul.mubr.msk.bf16.vlgmr.msra.gmra.mxu0 %vm583_vm0, %v1082_v56 }
 0x2d3   : > { %v1099_v62 = vpop.trf.xlu0 }
 0x2d4   : > { %v1083_v26 = vpop.trf.xlu1 }
 0x2d5   : > { %2475 = vmatprep.mubr.msk.bf16.mxu0 %vm583_vm0, %v1083_v26 }
 0x2d7   : > { %v1100_v2 = vpop.trf.xlu0 }
 0x2d8   : > { %v1084_v57 = vpop.trf.xlu1 }
 0x2d9   : > { %2476 = vmatmul.mubr.msk.bf16.gmra.mxu0 %vm583_vm0, %v1084_v57 }
 0x2db   : > { %v1101_v4 = vpop.trf.xlu0 }
 0x2dc   : > { %v1085_v27 = vpop.trf.xlu1 }
 0x2dd   : > { %2479 = vmatprep.mubr.msk.bf16.mxu0 %vm583_vm0, %v1085_v27 }
 0x2df   : > { %v1102_v3 = vpop.trf.xlu0 }
 0x2e0   : > { %v1086_v51 = vpop.trf.xlu1 }
 0x2e1   : > { %2480 = vmatmul.mubr.msk.bf16.gmra.mxu0 %vm583_vm0, %v1086_v51 }
 0x2e3   : > { %v1103_v10 = vpop.trf.xlu0 }
 0x2e4   : > { %v1087_v60 = vpop.trf.xlu1 }
 0x2e5   : > { %2483 = vmatprep.mubr.msk.bf16.mxu0 %vm583_vm0, %v1087_v60 }
 0x2e7   : > { %v1104_v11 = vpop.trf.xlu0 }
 0x2e8   : > { %v1088_v61 = vpop.trf.xlu1 }
 0x2e9   : > { %2484 = vmatmul.mubr.msk.bf16.gmra.mxu0 %vm583_vm0, %v1088_v61 }
 0x2ea   : > { %2487 = vmatprep.mubr.msk.bf16.mxu0 %vm583_vm0, %v1097_v58 }
 0x2f1   : > { %2488 = vmatmul.mubr.msk.bf16.gmra.mxu0 %vm583_vm0, %v1098_v59 }
 0x2f2   : > { %2491 = vmatprep.mubr.msk.bf16.mxu0 %vm583_vm0, %v1099_v62 }
 0x2f9   : > { %2492 = vmatmul.mubr.msk.bf16.gmra.mxu0 %vm583_vm0, %v1100_v2 }
 0x2fa   : > { %2495 = vmatprep.mubr.msk.bf16.mxu0 %vm583_vm0, %v1101_v4 }
 0x301   : > { %2496 = vmatmul.mubr.msk.bf16.gmra.mxu0 %vm583_vm0, %v1102_v3 }
 0x302   : > { %2499 = vmatprep.mubr.msk.bf16.mxu0 %vm583_vm0, %v1103_v10 }
 0x305   : > { %v1402_v8 = vpop.permute.xlu1 %1401 }
 0x309   : > { %2500 = vmatmul.mubr.msk.bf16.gmra.mxu0 %vm583_vm0, %v1104_v11  ;;  %v1397_v13 = vpop.permute.xlu0 %1396  ;;  %v1407_v24 = vpop.permute.xlu1 %1406 }
 0x30d   : > { %v1412_v0 = vpop.permute.xlu0 %1411  ;;  %v1417_v6 = vpop.permute.xlu1 %1416 }
 0x311   : > { %v1422_v43 = vpop.permute.xlu0 %1421  ;;  %v1427_v33 = vpop.permute.xlu1 %1426 }
 0x315   : > { %v1432_v14 = vpop.permute.xlu0 %1431  ;;  %v1558_v56 = vpop.permute.xlu1 %1557 }
 0x345   : > { %v1500_v12 = vpop.f32.mrf.mxu1 }
 0x346   : > { %v1501_v17 = vadd.f32 %v1500_v12, %v1397_v13 }
 0x347   : > { %v1502_v16 = vpop.f32.mrf.mxu1 }
 0x348   : > { %v1503_v63 = vadd.f32 %v1502_v16, %v1397_v13 }
 0x349   : > { %v1504_v9 = vpop.f32.mrf.mxu1 }
 0x34a   : > { %v2337_v18 = vpack.c.bf16 %v1503_v63, %v1501_v17  ;;  %v1505_v20 = vadd.f32 %v1504_v9, %v1402_v8 }
 0x34b   : > { %v1506_v19 = vpop.f32.mrf.mxu1 }
 0x34c   : > { %1909 = vst [vmem:[%s3335_s19] sm:$0xff] %v2337_v18  ;;  %v1507_v21 = vadd.f32 %v1506_v19, %v1402_v8 }
 0x34d   : > { %v1510_v23 = vpop.f32.mrf.mxu1 }
 0x34e   : > { %v2338_v22 = vpack.c.bf16 %v1507_v21, %v1505_v20  ;;  %v1511_v30 = vadd.f32 %v1510_v23, %v1407_v24 }
 0x34f   : > { %v1512_v29 = vpop.f32.mrf.mxu1 }
 0x350   : > { %1910 = vst [vmem:[%s3335_s19 + $0x8] sm:$0xff] %v2338_v22  ;;  %v1513_v7 = vadd.f32 %v1512_v29, %v1407_v24 }
 0x351   : > { %v1514_v31 = vpop.f32.mrf.mxu1 }
 0x352   : > { %v2339_v34 = vpack.c.bf16 %v1513_v7, %v1511_v30  ;;  %v1515_v1 = vadd.f32 %v1514_v31, %v1412_v0 }
 0x353   : > { %v1516_v35 = vpop.f32.mrf.mxu1 }
 0x354   : > { %1911 = vst [vmem:[%s3335_s19 + $0x10] sm:$0xff] %v2339_v34  ;;  %v1517_v28 = vadd.f32 %v1516_v35, %v1412_v0 }
 0x355   : > { %v1520_v36 = vpop.f32.mrf.mxu1 }
 0x356   : > { %v2340_v5 = vpack.c.bf16 %v1517_v28, %v1515_v1  ;;  %v1521_v37 = vadd.f32 %v1520_v36, %v1417_v6 }
 0x357   : > { %v1522_v25 = vpop.f32.mrf.mxu1 }
 0x358   : > { %1912 = vst [vmem:[%s3335_s19 + $0x18] sm:$0xff] %v2340_v5  ;;  %v1523_v40 = vadd.f32 %v1522_v25, %v1417_v6 }
 0x359   : > { %v1524_v41 = vpop.f32.mrf.mxu1 }
 0x35a   : > { %v2341_v42 = vpack.c.bf16 %v1523_v40, %v1521_v37  ;;  %v1525_v45 = vadd.f32 %v1524_v41, %v1422_v43 }
 0x35b   : > { %v1526_v44 = vpop.f32.mrf.mxu1 }
 0x35c   : > { %1913 = vst [vmem:[%s3335_s19 + $0x20] sm:$0xff] %v2341_v42  ;;  %v1527_v46 = vadd.f32 %v1526_v44, %v1422_v43 }
 0x35d   : > { %v1530_v47 = vpop.f32.mrf.mxu1 }
 0x35e   : > { %v2342_v32 = vpack.c.bf16 %v1527_v46, %v1525_v45  ;;  %v1531_v38 = vadd.f32 %v1530_v47, %v1427_v33 }
 0x35f   : > { %v1532_v48 = vpop.f32.mrf.mxu1 }
 0x360   : > { %1914 = vst [vmem:[%s3335_s19 + $0x28] sm:$0xff] %v2342_v32  ;;  %v1533_v49 = vadd.f32 %v1532_v48, %v1427_v33 }
 0x361   : > { %v1534_v39 = vpop.f32.mrf.mxu1 }
 0x362   : > { %v2343_v50 = vpack.c.bf16 %v1533_v49, %v1531_v38  ;;  %v1535_v53 = vadd.f32 %v1534_v39, %v1432_v14 }
 0x363   : > { %v1536_v52 = vpop.f32.mrf.mxu1 }
 0x364   : > { %1915 = vst [vmem:[%s3335_s19 + $0x30] sm:$0xff] %v2343_v50  ;;  %v1537_v54 = vadd.f32 %v1536_v52, %v1432_v14 }
 0x365   : > { %v1661_v15 = vpop.f32.mrf.mxu1 }
 0x366   : > { %v2344_v55 = vpack.c.bf16 %v1537_v54, %v1535_v53  ;;  %v1662_v57 = vadd.f32 %v1661_v15, %v1558_v56 }
 0x367   : > { %v1663_v26 = vpop.f32.mrf.mxu1 }
 0x368   : > { %1916 = vst [vmem:[%s3335_s19 + $0x38] sm:$0xff] %v2344_v55  ;;  %v1664_v27 = vadd.f32 %v1663_v26, %v1558_v56 }
 0x369   : > { %v1665_v58 = vpop.f32.mrf.mxu1 }
 0x36a   : > { %2746 = shalt.err (!%p2743_p3)
}
 0x36b   : > { %s2747_s19 = scalar_lea.hbm %s3353_s20, 1024  ;;  %s2751_s28 = scalar_lea.hbm %s3564_s11, 2048 }
 0x36c   : > { %p2748_p9 = scmp.ne.s32.totalorder %s3353_s20, %s2747_s19  ;;  %p2752_p12 = scmp.lt.s32.totalorder %s3353_s20, %s3564_s11 }
 0x36d   : > { %p2753_p10 = scmp.lt.s32.totalorder %s2751_s28, %s2747_s19 }
 0x36e   : > { %p2749_p4 = pnand %p2748_p9, %p2953_p5 }
 0x36f   : > { %p2754_p8 = por %p2753_p10, %p2752_p12 }
 0x370   : > { %p2750_p7 = pneg %p2749_p4 }
 0x372   : > { %p2755_p11 = pnand %p2754_p8, %p2750_p7 }
 0x374   : > { %2758 = shalt.err (!%p2755_p11)
}
 0x375   : > { %s3578_s18 = smov 128   ;;  %s3579_s26 = smov 8   ;;  %v2345_v51 = vpack.c.bf16 %v1664_v27, %v1662_v57  ;;  %v1563_v59 = vpop.permute.xlu0 %1562  ;;  %v1667_v60 = vpop.f32.mrf.mxu1 }
 0x376   : > { %s3596_s27 = scalar_lea.sflag [#allocation4], %s3330_s17  ;;  %s3597_s16 = sshll.u32 %s3330_s17, 6  ;;  %v1666_v61 = vadd.f32 %v1665_v58, %v1563_v59  ;;  %v1668_v62 = vadd.f32 %v1667_v60, %v1563_v59  ;;  %v1568_v3 = vpop.permute.xlu1 %1567 }
 0x377   : > { %2523 = dma.vmem_to_hbm [thread:$0]  (%p2953_p5), %s3346_s23, 1024, %s3353_s20, %s3596_s27, %s3578_s18, %s3578_s18, %s3579_s26   ;;  %v1671_v2 = vpop.f32.mrf.mxu1 }
 0x378   : > { %s3384_s29 = scalar_lea.vmem [#allocation11], %s3597_s16  ;;  %v2346_v4 = vpack.c.bf16 %v1668_v62, %v1666_v61  ;;  %v1672_v11 = vadd.f32 %v1671_v2, %v1568_v3  ;;  %s3598_s20 = sshll.u32 %s2936_s25, 10 }
 0x379   : > { %1965 = vst [vmem:[%s3384_s29] sm:$0xff] %v2345_v51  ;;  %v1673_v10 = vpop.f32.mrf.mxu1  ;;  %v1573_v17 = vpop.permute.xlu0 %1572  ;;  %s2016_s23 = sshll.u32 %s3384_s29, 4  ;;  %s3401_s14 = scalar_lea.hbm %s3565_s12, %s3598_s20  ;;  %s3394_s23 = int_to_ptr.vmem [resolvable:$true] %s2016_s23 }
 0x37a   : > { %1966 = vst [vmem:[%s3384_s29 + $0x8] sm:$0xff] %v2346_v4  ;;  %v1674_v12 = vadd.f32 %v1673_v10, %v1568_v3  ;;  %v1578_v20 = vpop.permute.xlu1 %1577  ;;  %s1984_s28 = scalar_lea.sflag [#allocation12], %s3330_s17  ;;  %s2759_s27 = scalar_lea.vmem %s3394_s23, 1024 }
 0x37b   : > { %v1675_v13 = vpop.f32.mrf.mxu1  ;;  %p2760_p1 = scmp.ne.s32.totalorder %s3394_s23, %s2759_s27  ;;  %s2849_s16 = smov [#allocation11]  }
 0x37c   : > { %v2347_v16 = vpack.c.bf16 %v1674_v12, %v1672_v11  ;;  %v1676_v8 = vadd.f32 %v1675_v13, %v1573_v17  ;;  %s2763_s18 = sshll.u32 %s2849_s16, 4  ;;  %s2764_s18 = int_to_ptr.vmem [resolvable:$false] %s2763_s18 }
 0x37d   : > { %v1677_v63 = vpop.f32.mrf.mxu1  ;;  %v1583_v30 = vpop.permute.xlu0 %1582  ;;  %p2761_p0 = pnand %p2760_p1, %p2953_p5  ;;  %s2765_s26 = scalar_lea.vmem %s2764_s18, 2048 }
 0x37e   : > { %1967 = vst [vmem:[%s3384_s29 + $0x10] sm:$0xff] %v2347_v16  ;;  %v1678_v9 = vadd.f32 %v1677_v63, %v1573_v17  ;;  %v1588_v1 = vpop.permute.xlu1 %1587  ;;  %p2766_p13 = scmp.lt.s32.totalorder %s3394_s23, %s2764_s18  ;;  %p2767_p3 = scmp.lt.s32.totalorder %s2765_s26, %s2759_s27 }
 0x37f   : > { %v1681_v18 = vpop.f32.mrf.mxu1  ;;  %p2762_p2 = pneg %p2761_p0 }
 0x380   : > { %v2348_v19 = vpack.c.bf16 %v1678_v9, %v1676_v8  ;;  %v1682_v23 = vadd.f32 %v1681_v18, %v1578_v20  ;;  %p2768_p9 = por %p2767_p3, %p2766_p13 }
 0x381   : > { %v1683_v21 = vpop.f32.mrf.mxu1  ;;  %v1593_v37 = vpop.permute.xlu0 %1592 }
 0x382   : > { %1968 = vst [vmem:[%s3384_s29 + $0x18] sm:$0xff] %v2348_v19  ;;  %v1684_v22 = vadd.f32 %v1683_v21, %v1578_v20  ;;  %p2769_p4 = pnand %p2768_p9, %p2762_p2 }
 0x383   : > { %v1685_v24 = vpop.f32.mrf.mxu1 }
 0x384   : > { %v2349_v29 = vpack.c.bf16 %v1684_v22, %v1682_v23  ;;  %v1686_v31 = vadd.f32 %v1685_v24, %v1583_v30 }
 0x385   : > { %v1687_v7 = vpop.f32.mrf.mxu1 }
 0x386   : > { %1969 = vst [vmem:[%s3384_s29 + $0x20] sm:$0xff] %v2349_v29  ;;  %v1688_v34 = vadd.f32 %v1687_v7, %v1583_v30 }
 0x387   : > { %v1691_v0 = vpop.f32.mrf.mxu1 }
 0x388   : > { %v2350_v35 = vpack.c.bf16 %v1688_v34, %v1686_v31  ;;  %v1692_v36 = vadd.f32 %v1691_v0, %v1588_v1 }
 0x389   : > { %v1693_v28 = vpop.f32.mrf.mxu1 }
 0x38a   : > { %1970 = vst [vmem:[%s3384_s29 + $0x28] sm:$0xff] %v2350_v35  ;;  %v1694_v5 = vadd.f32 %v1693_v28, %v1588_v1 }
 0x38b   : > { %v1695_v6 = vpop.f32.mrf.mxu1 }
 0x38c   : > { %v2351_v25 = vpack.c.bf16 %v1694_v5, %v1692_v36  ;;  %v1696_v41 = vadd.f32 %v1695_v6, %v1593_v37 }
 0x38d   : > { %v1697_v40 = vpop.f32.mrf.mxu1 }
 0x38e   : > { %1971 = vst [vmem:[%s3384_s29 + $0x30] sm:$0xff] %v2351_v25  ;;  %v1698_v42 = vadd.f32 %v1697_v40, %v1593_v37 }
 0x390   : > { %v2352_v43 = vpack.c.bf16 %v1698_v42, %v1696_v41 }
 0x392   : > { %1972 = vst [vmem:[%s3384_s29 + $0x38] sm:$0xff] %v2352_v43 }
 0x393   : > { %2772 = shalt.err (!%p2769_p4)
}
 0x394   : > { %s2773_s25 = scalar_lea.hbm %s3401_s14, 1024  ;;  %s2777_s20 = scalar_lea.hbm %s3565_s12, 2048 }
 0x395   : > { %p2774_p7 = scmp.ne.s32.totalorder %s3401_s14, %s2773_s25  ;;  %p2778_p8 = scmp.lt.s32.totalorder %s3401_s14, %s3565_s12 }
 0x396   : > { %p2779_p11 = scmp.lt.s32.totalorder %s2777_s20, %s2773_s25 }
 0x397   : > { %p2775_p12 = pnand %p2774_p7, %p2953_p5 }
 0x398   : > { %p2780_p1 = por %p2779_p11, %p2778_p8 }
 0x399   : > { %p2776_p10 = pneg %p2775_p12 }
 0x39b   : > { %p2781_p0 = pnand %p2780_p1, %p2776_p10 }
 0x39d   : > { %2784 = shalt.err (!%p2781_p0)
}
 0x39e   : > { %s3599_s18 = smov 8   ;;  %s3600_s26 = smov 128   ;;  %v3431_v44 = vld [vmem:[%s3558_s5] ss:$0 sm:$0xff]  ;;  %v2473_v45 = vpop.f32.mrf.mxu0  ;;  %vm1828_vm1 = vcmask 519168  }
 0x39f   : > { %2524 = dma.vmem_to_hbm [thread:$0]  (%p2953_p5), %s3394_s23, 1024, %s3401_s14, %s1984_s28, %s3600_s26, %s3600_s26, %s3599_s18   ;;  %v1228_v46 = vadd.f32 %v2473_v45, %v3431_v44 }
 0x3a0   : > { %v1219_v47 = vpop.f32.mrf.mxu0  ;;  %s3601_s13 = sshll.u32 %s3035_s15, 7 }
 0x3a1   : > { %v1348_v32 = vmul.f32 0.125, %v1228_v46  ;;  %v1220_v33 = vadd.f32 %v3431_v44, %v1219_v47  ;;  %s3440_s29 = scalar_lea.vmem %s3563_s10, %s3601_s13 }
 0x3a2   : > { %v2474_v48 = vpop.f32.mrf.mxu0 }
 0x3a3   : > { %v2307_v38 = vpack.c.bf16 %v1348_v32, %v1348_v32  ;;  %v1346_v49 = vmul.f32 0.125, %v1220_v33  ;;  %v1231_v39 = vadd.f32 %v2474_v48, %v3431_v44 }
 0x3a4   : > { %v1222_v50 = vpop.f32.mrf.mxu0 }
 0x3a5   : > { %1831 = vst.msk [vmem:[%s3440_s29 + $0x8] sm:$0xf] %vm1828_vm1, %v2307_v38  ;;  %v2305_v14 = vpack.c.bf16 %v1346_v49, %v1346_v49  ;;  %v1349_v52 = vmul.f32 0.125, %v1231_v39  ;;  %v1223_v53 = vadd.f32 %v3431_v44, %v1222_v50 }
 0x3a6   : > { %v2477_v54 = vpop.f32.mrf.mxu0 }
 0x3a7   : > { %1829 = vst.msk [vmem:[%s3440_s29] sm:$0xf] %vm1828_vm1, %v2305_v14  ;;  %v2308_v15 = vpack.c.bf16 %v1349_v52, %v1349_v52  ;;  %v1347_v55 = vmul.f32 0.125, %v1223_v53  ;;  %v1244_v56 = vadd.f32 %v2477_v54, %v3431_v44 }
 0x3a8   : > { %v1235_v26 = vpop.f32.mrf.mxu0 }
 0x3a9   : > { %1832 = vst.msk [vmem:[%s3440_s29 + $0xc] sm:$0xf] %vm1828_vm1, %v2308_v15  ;;  %v2306_v57 = vpack.c.bf16 %v1347_v55, %v1347_v55  ;;  %v1352_v27 = vmul.f32 0.125, %v1244_v56  ;;  %v1236_v58 = vadd.f32 %v3431_v44, %v1235_v26 }
 0x3aa   : > { %v2478_v51 = vpop.f32.mrf.mxu0 }
 0x3ab   : > { %1830 = vst.msk [vmem:[%s3440_s29 + $0x4] sm:$0xf] %vm1828_vm1, %v2306_v57  ;;  %v2311_v59 = vpack.c.bf16 %v1352_v27, %v1352_v27  ;;  %v1350_v60 = vmul.f32 0.125, %v1236_v58  ;;  %v1247_v61 = vadd.f32 %v2478_v51, %v3431_v44 }
 0x3ac   : > { %v1238_v62 = vpop.f32.mrf.mxu0 }
 0x3ad   : > { %1835 = vst.msk [vmem:[%s3440_s29 + $0x18] sm:$0xf] %vm1828_vm1, %v2311_v59  ;;  %v2309_v2 = vpack.c.bf16 %v1350_v60, %v1350_v60  ;;  %v1353_v4 = vmul.f32 0.125, %v1247_v61  ;;  %v1239_v3 = vadd.f32 %v3431_v44, %v1238_v62 }
 0x3ae   : > { %v2481_v10 = vpop.f32.mrf.mxu0 }
 0x3af   : > { %1833 = vst.msk [vmem:[%s3440_s29 + $0x10] sm:$0xf] %vm1828_vm1, %v2309_v2  ;;  %v2312_v11 = vpack.c.bf16 %v1353_v4, %v1353_v4  ;;  %v1351_v12 = vmul.f32 0.125, %v1239_v3  ;;  %v1260_v13 = vadd.f32 %v2481_v10, %v3431_v44 }
 0x3b0   : > { %v1251_v16 = vpop.f32.mrf.mxu0 }
 0x3b1   : > { %1836 = vst.msk [vmem:[%s3440_s29 + $0x1c] sm:$0xf] %vm1828_vm1, %v2312_v11  ;;  %v2310_v17 = vpack.c.bf16 %v1351_v12, %v1351_v12  ;;  %v1356_v63 = vmul.f32 0.125, %v1260_v13  ;;  %v1252_v8 = vadd.f32 %v3431_v44, %v1251_v16 }
 0x3b2   : > { %v2482_v9 = vpop.f32.mrf.mxu0 }
 0x3b3   : > { %1834 = vst.msk [vmem:[%s3440_s29 + $0x14] sm:$0xf] %vm1828_vm1, %v2310_v17  ;;  %v2315_v18 = vpack.c.bf16 %v1356_v63, %v1356_v63  ;;  %v1354_v19 = vmul.f32 0.125, %v1252_v8  ;;  %v1263_v20 = vadd.f32 %v2482_v9, %v3431_v44 }
 0x3b4   : > { %v1254_v21 = vpop.f32.mrf.mxu0 }
 0x3b5   : > { %1839 = vst.msk [vmem:[%s3440_s29 + $0x28] sm:$0xf] %vm1828_vm1, %v2315_v18  ;;  %v2313_v23 = vpack.c.bf16 %v1354_v19, %v1354_v19  ;;  %v1357_v22 = vmul.f32 0.125, %v1263_v20  ;;  %v1255_v24 = vadd.f32 %v3431_v44, %v1254_v21 }
 0x3b6   : > { %v2485_v29 = vpop.f32.mrf.mxu0 }
 0x3b7   : > { %1837 = vst.msk [vmem:[%s3440_s29 + $0x20] sm:$0xf] %vm1828_vm1, %v2313_v23  ;;  %v2316_v30 = vpack.c.bf16 %v1357_v22, %v1357_v22  ;;  %v1355_v7 = vmul.f32 0.125, %v1255_v24  ;;  %v1276_v31 = vadd.f32 %v2485_v29, %v3431_v44 }
 0x3b8   : > { %v1267_v34 = vpop.f32.mrf.mxu0 }
 0x3b9   : > { %1840 = vst.msk [vmem:[%s3440_s29 + $0x2c] sm:$0xf] %vm1828_vm1, %v2316_v30  ;;  %v2314_v0 = vpack.c.bf16 %v1355_v7, %v1355_v7  ;;  %v1360_v35 = vmul.f32 0.125, %v1276_v31  ;;  %v1268_v1 = vadd.f32 %v3431_v44, %v1267_v34 }
 0x3ba   : > { %v2486_v28 = vpop.f32.mrf.mxu0 }
 0x3bb   : > { %1838 = vst.msk [vmem:[%s3440_s29 + $0x24] sm:$0xf] %vm1828_vm1, %v2314_v0  ;;  %v2319_v36 = vpack.c.bf16 %v1360_v35, %v1360_v35  ;;  %v1358_v5 = vmul.f32 0.125, %v1268_v1  ;;  %v1279_v6 = vadd.f32 %v2486_v28, %v3431_v44 }
 0x3bc   : > { %v1270_v25 = vpop.f32.mrf.mxu0 }
 0x3bd   : > { %1843 = vst.msk [vmem:[%s3440_s29 + $0x38] sm:$0xf] %vm1828_vm1, %v2319_v36  ;;  %v2317_v37 = vpack.c.bf16 %v1358_v5, %v1358_v5  ;;  %v1361_v40 = vmul.f32 0.125, %v1279_v6  ;;  %v1271_v41 = vadd.f32 %v3431_v44, %v1270_v25 }
 0x3be   : > { %v2489_v42 = vpop.f32.mrf.mxu0 }
 0x3bf   : > { %1841 = vst.msk [vmem:[%s3440_s29 + $0x30] sm:$0xf] %vm1828_vm1, %v2317_v37  ;;  %v2320_v43 = vpack.c.bf16 %v1361_v40, %v1361_v40  ;;  %v1359_v45 = vmul.f32 0.125, %v1271_v41  ;;  %v1292_v46 = vadd.f32 %v2489_v42, %v3431_v44 }
 0x3c0   : > { %v1283_v47 = vpop.f32.mrf.mxu0 }
 0x3c1   : > { %1844 = vst.msk [vmem:[%s3440_s29 + $0x3c] sm:$0xf] %vm1828_vm1, %v2320_v43  ;;  %v2318_v32 = vpack.c.bf16 %v1359_v45, %v1359_v45  ;;  %v1364_v33 = vmul.f32 0.125, %v1292_v46  ;;  %v1284_v48 = vadd.f32 %v3431_v44, %v1283_v47 }
 0x3c2   : > { %v2490_v38 = vpop.f32.mrf.mxu0 }
 0x3c3   : > { %1842 = vst.msk [vmem:[%s3440_s29 + $0x34] sm:$0xf] %vm1828_vm1, %v2318_v32  ;;  %v2323_v49 = vpack.c.bf16 %v1364_v33, %v1364_v33  ;;  %v1362_v39 = vmul.f32 0.125, %v1284_v48  ;;  %v1295_v50 = vadd.f32 %v2490_v38, %v3431_v44 }
 0x3c4   : > { %v1286_v14 = vpop.f32.mrf.mxu0 }
 0x3c5   : > { %1847 = vst.msk [vmem:[%s3440_s29 + $0x48] sm:$0xf] %vm1828_vm1, %v2323_v49  ;;  %v2321_v52 = vpack.c.bf16 %v1362_v39, %v1362_v39  ;;  %v1365_v53 = vmul.f32 0.125, %v1295_v50  ;;  %v1287_v54 = vadd.f32 %v3431_v44, %v1286_v14 }
 0x3c6   : > { %v2493_v15 = vpop.f32.mrf.mxu0 }
 0x3c7   : > { %1845 = vst.msk [vmem:[%s3440_s29 + $0x40] sm:$0xf] %vm1828_vm1, %v2321_v52  ;;  %v2324_v55 = vpack.c.bf16 %v1365_v53, %v1365_v53  ;;  %v1363_v56 = vmul.f32 0.125, %v1287_v54  ;;  %v1308_v26 = vadd.f32 %v2493_v15, %v3431_v44 }
 0x3c8   : > { %v1299_v57 = vpop.f32.mrf.mxu0 }
 0x3c9   : > { %1848 = vst.msk [vmem:[%s3440_s29 + $0x4c] sm:$0xf] %vm1828_vm1, %v2324_v55  ;;  %v2322_v27 = vpack.c.bf16 %v1363_v56, %v1363_v56  ;;  %v1368_v58 = vmul.f32 0.125, %v1308_v26  ;;  %v1300_v51 = vadd.f32 %v3431_v44, %v1299_v57 }
 0x3ca   : > { %v2494_v59 = vpop.f32.mrf.mxu0 }
 0x3cb   : > { %1846 = vst.msk [vmem:[%s3440_s29 + $0x44] sm:$0xf] %vm1828_vm1, %v2322_v27  ;;  %v2327_v60 = vpack.c.bf16 %v1368_v58, %v1368_v58  ;;  %v1366_v61 = vmul.f32 0.125, %v1300_v51  ;;  %v1311_v62 = vadd.f32 %v2494_v59, %v3431_v44 }
 0x3cc   : > { %v1302_v2 = vpop.f32.mrf.mxu0 }
 0x3cd   : > { %1851 = vst.msk [vmem:[%s3440_s29 + $0x58] sm:$0xf] %vm1828_vm1, %v2327_v60  ;;  %v2325_v4 = vpack.c.bf16 %v1366_v61, %v1366_v61  ;;  %v1369_v3 = vmul.f32 0.125, %v1311_v62  ;;  %v1303_v10 = vadd.f32 %v3431_v44, %v1302_v2 }
 0x3ce   : > { %v2497_v11 = vpop.f32.mrf.mxu0 }
 0x3cf   : > { %1849 = vst.msk [vmem:[%s3440_s29 + $0x50] sm:$0xf] %vm1828_vm1, %v2325_v4  ;;  %v2328_v12 = vpack.c.bf16 %v1369_v3, %v1369_v3  ;;  %v1367_v13 = vmul.f32 0.125, %v1303_v10  ;;  %v1324_v16 = vadd.f32 %v2497_v11, %v3431_v44 }
 0x3d0   : > { %v1315_v17 = vpop.f32.mrf.mxu0 }
 0x3d1   : > { %1852 = vst.msk [vmem:[%s3440_s29 + $0x5c] sm:$0xf] %vm1828_vm1, %v2328_v12  ;;  %v2326_v63 = vpack.c.bf16 %v1367_v13, %v1367_v13  ;;  %v1372_v8 = vmul.f32 0.125, %v1324_v16  ;;  %v1316_v9 = vadd.f32 %v3431_v44, %v1315_v17 }
 0x3d2   : > { %v2498_v18 = vpop.f32.mrf.mxu0 }
 0x3d3   : > { %1850 = vst.msk [vmem:[%s3440_s29 + $0x54] sm:$0xf] %vm1828_vm1, %v2326_v63  ;;  %v2331_v19 = vpack.c.bf16 %v1372_v8, %v1372_v8  ;;  %v1370_v20 = vmul.f32 0.125, %v1316_v9  ;;  %v1327_v21 = vadd.f32 %v2498_v18, %v3431_v44 }
 0x3d4   : > { %v1318_v23 = vpop.f32.mrf.mxu0 }
 0x3d5   : > { %1855 = vst.msk [vmem:[%s3440_s29 + $0x68] sm:$0xf] %vm1828_vm1, %v2331_v19  ;;  %v2329_v22 = vpack.c.bf16 %v1370_v20, %v1370_v20  ;;  %v1373_v24 = vmul.f32 0.125, %v1327_v21  ;;  %v1319_v29 = vadd.f32 %v3431_v44, %v1318_v23 }
 0x3d6   : > { %v2501_v30 = vpop.f32.mrf.mxu0 }
 0x3d7   : > { %1853 = vst.msk [vmem:[%s3440_s29 + $0x60] sm:$0xf] %vm1828_vm1, %v2329_v22  ;;  %v2332_v7 = vpack.c.bf16 %v1373_v24, %v1373_v24  ;;  %v1371_v31 = vmul.f32 0.125, %v1319_v29  ;;  %v1340_v34 = vadd.f32 %v2501_v30, %v3431_v44 }
 0x3d8   : > { %v1331_v0 = vpop.f32.mrf.mxu0 }
 0x3d9   : > { %1856 = vst.msk [vmem:[%s3440_s29 + $0x6c] sm:$0xf] %vm1828_vm1, %v2332_v7  ;;  %v2330_v35 = vpack.c.bf16 %v1371_v31, %v1371_v31  ;;  %v1376_v1 = vmul.f32 0.125, %v1340_v34  ;;  %v1332_v28 = vadd.f32 %v3431_v44, %v1331_v0 }
 0x3da   : > { %v2502_v36 = vpop.f32.mrf.mxu0 }
 0x3db   : > { %1854 = vst.msk [vmem:[%s3440_s29 + $0x64] sm:$0xf] %vm1828_vm1, %v2330_v35  ;;  %v2335_v5 = vpack.c.bf16 %v1376_v1, %v1376_v1  ;;  %v1374_v6 = vmul.f32 0.125, %v1332_v28  ;;  %v1343_v25 = vadd.f32 %v2502_v36, %v3431_v44 }
 0x3dc   : > { %v1334_v37 = vpop.f32.mrf.mxu0 }
 0x3dd   : > { %1859 = vst.msk [vmem:[%s3440_s29 + $0x78] sm:$0xf] %vm1828_vm1, %v2335_v5  ;;  %v2333_v40 = vpack.c.bf16 %v1374_v6, %v1374_v6  ;;  %v1377_v41 = vmul.f32 0.125, %v1343_v25  ;;  %v1335_v42 = vadd.f32 %v3431_v44, %v1334_v37 }
 0x3df   : > { %1857 = vst.msk [vmem:[%s3440_s29 + $0x70] sm:$0xf] %vm1828_vm1, %v2333_v40  ;;  %v2336_v43 = vpack.c.bf16 %v1377_v41, %v1377_v41  ;;  %v1375_v45 = vmul.f32 0.125, %v1335_v42 }
 0x3e1   : > { %1860 = vst.msk [vmem:[%s3440_s29 + $0x7c] sm:$0xf] %vm1828_vm1, %v2336_v43  ;;  %v2334_v46 = vpack.c.bf16 %v1375_v45, %v1375_v45 }
 0x3e3   : > { %1858 = vst.msk [vmem:[%s3440_s29 + $0x74] sm:$0xf] %vm1828_vm1, %v2334_v46 }
 0x3e4 PF: > { %p2555_p5 = scmp.ge.s32.totalorder %s2835_s24, 2  ;;  %s2039_s23 = sand.u32 1, %s2823_s21  }
 0x3e5   : > { %s2040_s14 = scalar_lea.sflag [#allocation4], %s2039_s23 }
 0x3e6   : > { %p2541_p2 = pnand %p2555_p5, %p2957_p6 }
 0x3e8   : > { %p2542_p13 = pneg %p2541_p2 }
 0x3ea   : > { %2814 = dma.done.wait (%p2542_p13), %s2040_s14, 1024  }
 0x3eb   : > { %2816 = vsyncadd (%p2542_p13), %s2040_s14, 4294966272  ;;  %s2049_s28 = scalar_lea.sflag [#allocation12], %s2039_s23 }
 0x3ec   : > { %2818 = dma.done.wait (%p2542_p13), %s2049_s28, 1024  }
 0x3ed   : > { %2820 = vsyncadd (%p2542_p13), %s2049_s28, 4294966272  ;;  %s3603_s24 = sld [smem:[#allocation19_spill]]  ;;  %s3606_s21 = smov %s2827_s22 }
 0x3ee   : > { %s3604_s20 = sld [smem:[#allocation18_spill]] }
 0x3ef   : > { %s3605_s23 = sld [smem:[#allocation20_spill]] }
 0x3f3   : > { %p29_p3 = scmp.ge.s32.totalorder %s3603_s24, 4  }
 0x3f4   : > { %s3607_s22 = smov %s3604_s20 }
 0x3f5   :  { %31 = sbr.rel (!%p29_p3) target bundleno = 8 (0x8), region = 141 }
 0x3fa   :  { %2054 = vsyncpa [#allocation3], 1 }
 0x3fb   :  { %2056 = vsyncpa [#allocation3 + $0x1], 1 }
 0x3fc   :  { %2057 = vsyncpa [#allocation6], 1 }
 0x3fd   :  { %2058 = vsyncpa [#allocation9], 1 }
 0x3fe   :  { %2059 = vsyncpa [#allocation4], 1 }
 0x3ff   :  { %2061 = vsyncpa [#allocation4 + $0x1], 1 }
 0x400   :  { %2062 = vsyncpa [#allocation12], 1 }
 0x401   :  { %2064 = vsyncpa [#allocation12 + $0x1], 1 }

</bundles_post_ra>
